<compile_context>
chip_gen: v6e
topology: v6e:2x2x1
jax: 0.10.0
libtpu: 0.0.40
codegen_flags: <defaults>
</compile_context>

<pallas_src>
import functools

import jax
import jax.numpy as jnp
from jax import lax
from jax.experimental import pallas as pl
from jax.experimental.pallas import tpu as pltpu


# --------------------------------------------------------------------------
# helpers
# --------------------------------------------------------------------------
def _layernorm(x, g, b, eps=1e-5):
    mu = jnp.mean(x, axis=-1, keepdims=True)
    var = jnp.mean(jnp.square(x - mu), axis=-1, keepdims=True)
    return (x - mu) * lax.rsqrt(var + eps) * g + b


def _full_block(arr):
    """Whole-array block with a constant index map (no late-binding bug)."""
    nd = arr.ndim
    return pl.BlockSpec(arr.shape, lambda *_: (0,) * nd)


def _pick_tile(n, pref):
    t = min(pref, n)
    while t > 8 and n % t:
        t //= 2
    assert n % t == 0, f"token count {n} not divisible by tile {t}"
    return t


# --------------------------------------------------------------------------
# kernel 1: GroupNorm(folded) + proj_in + LayerNorm1 + fused QKV
# --------------------------------------------------------------------------
def prep_kernel(x_ref, gnsc_ref, gnsh_ref, w_in_ref, b_in_ref,
                ln1_g_ref, ln1_b_ref, wqkv_ref,
                h_ref, q_ref, k_ref, v_ref, *, n_heads, d_head):
    x = x_ref[...]                                         # (tp, C) f32
    # GroupNorm(num_groups=1): global stats folded into per-(batch,channel)
    # scale/shift computed in the wrapper.
    xn = x * gnsc_ref[...] + gnsh_ref[...]

    # proj_in: 1x1 conv == per-token linear.  bf16 MXU inputs, f32 accum.
    h = jnp.dot(xn.astype(jnp.bfloat16), w_in_ref[...],
                preferred_element_type=jnp.float32) + b_in_ref[...]
    h_ref[...] = h

    n = _layernorm(h, ln1_g_ref[...], ln1_b_ref[...])
    qkv = jnp.dot(n.astype(jnp.bfloat16), wqkv_ref[...],
                  preferred_element_type=jnp.float32)      # (tp, 3*D)

    d_model = n_heads * d_head
    for hh in range(n_heads):                              # small static loop
        q_ref[hh] = qkv[:, hh * d_head:(hh + 1) * d_head].astype(jnp.bfloat16)
        k_ref[hh] = qkv[:, d_model + hh * d_head:
                           d_model + (hh + 1) * d_head].astype(jnp.bfloat16)
        v_ref[hh] = qkv[:, 2 * d_model + hh * d_head:
                           2 * d_model + (hh + 1) * d_head].astype(jnp.bfloat16)


# --------------------------------------------------------------------------
# kernel 2: flash attention (online softmax over KV tiles) + out-proj +
#           GEGLU feed-forward + proj_out + residuals (fused epilogue)
# --------------------------------------------------------------------------
def attn_ff_kernel(q_ref, k_ref, v_ref, h_ref, x_ref,
                   wo_ref, bo_ref, ln3_g_ref, ln3_b_ref,
                   wff1_ref, bff1_ref, wff2_ref, bff2_ref,
                   w_out_ref, b_out_ref,
                   o_ref,
                   m_sc, l_sc, acc_sc, *, n_heads, d_head):
    ki = pl.program_id(2)

    @pl.when(ki == 0)
    def _init():
        m_sc[...] = jnp.full(m_sc.shape, -jnp.inf, dtype=jnp.float32)
        l_sc[...] = jnp.zeros(l_sc.shape, dtype=jnp.float32)
        acc_sc[...] = jnp.zeros(acc_sc.shape, dtype=jnp.float32)

    q = q_ref[...]                                         # (H, tq, dh) bf16 (pre-scaled)
    k = k_ref[...]                                         # (H, tk, dh) bf16
    v = v_ref[...]                                         # (H, tk, dh) bf16

    # head-batched score matmul: no per-head loop, no transposes, no concat.
    s = jnp.einsum('hqd,hkd->hqk', q, k,
                   preferred_element_type=jnp.float32)     # (H, tq, tk) f32

    m_prev = m_sc[...]
    m_new = jnp.maximum(m_prev, jnp.max(s, axis=-1, keepdims=True))
    alpha = jnp.exp(m_prev - m_new)
    p = jnp.exp(s - m_new)
    l_sc[...] = alpha * l_sc[...] + jnp.sum(p, axis=-1, keepdims=True)
    acc_sc[...] = alpha * acc_sc[...] + jnp.einsum(
        'hqk,hkd->hqd', p.astype(jnp.bfloat16), v,
        preferred_element_type=jnp.float32)
    m_sc[...] = m_new

    @pl.when(ki == pl.num_programs(2) - 1)
    def _epilogue():
        # softmax normalization via EUP reciprocal (frees VPU slots).
        inv_l = pl.reciprocal(l_sc[...], approx=True)      # (H, tq, 1)
        o = acc_sc[...] * inv_l                            # (H, tq, dh) f32

        # merge heads through the output projection:
        #   concat(o_h) @ Wo == sum_h o_h @ Wo[h]   (Wo stored as (H, dh, D))
        attn = jnp.dot(o[0].astype(jnp.bfloat16), wo_ref[0],
                       preferred_element_type=jnp.float32)
        for hh in range(1, n_heads):
            attn = attn + jnp.dot(o[hh].astype(jnp.bfloat16), wo_ref[hh],
                                  preferred_element_type=jnp.float32)

        hcur = h_ref[...] + attn + bo_ref[...]             # residual (dropout=0)

        # GEGLU feed-forward on the token tile only.
        n3 = _layernorm(hcur, ln3_g_ref[...], ln3_b_ref[...])
        ff = jnp.dot(n3.astype(jnp.bfloat16), wff1_ref[...],
                     preferred_element_type=jnp.float32) + bff1_ref[...]
        d_ff = ff.shape[-1] // 2
        ff = ff[:, :d_ff] * jax.nn.gelu(ff[:, d_ff:], approximate=False)
        ff = jnp.dot(ff.astype(jnp.bfloat16), wff2_ref[...],
                     preferred_element_type=jnp.float32) + bff2_ref[...]
        hcur = hcur + ff                                   # residual

        # proj_out (1x1 conv) + outer residual with the original input.
        y = jnp.dot(hcur.astype(jnp.bfloat16), w_out_ref[...],
                    preferred_element_type=jnp.float32) + b_out_ref[...]
        o_ref[...] = y + x_ref[...]


# --------------------------------------------------------------------------
# wrapper
# --------------------------------------------------------------------------
def spatial_transformer(x_nchw, params, *, n_heads, d_head,
                        tp=512, tq=128, tk=128):
    b, c, hgt, wid = x_nchw.shape
    n_tok = hgt * wid
    inner = n_heads * d_head
    tp = _pick_tile(n_tok, tp)      # larger streaming tile for the prep pass
    tq = _pick_tile(n_tok, tq)
    tk = _pick_tile(n_tok, tk)
    np_, nq, nk = n_tok // tp, n_tok // tq, n_tok // tk

    # NCHW -> (B, N, C), channels on the lane dim.
    x_tok = jnp.transpose(x_nchw, (0, 2, 3, 1)).reshape(b, n_tok, c).astype(jnp.float32)

    # GroupNorm(num_groups=1, eps=1e-6) statistics are a *global* per-batch
    # reduction over all tokens & channels, so they cannot be computed inside
    # a token-tiled kernel.  Compute the 2 scalars per batch here (cheap) and
    # fold them together with the affine into a per-(batch, channel)
    # scale/shift that the prep kernel applies.
    # TODO(synk): move this reduction into a tiny two-phase Pallas pass if the
    # extra XLA reduction over x ever shows up in profiles.
    mean = jnp.mean(x_tok, axis=(1, 2), keepdims=True)                   # (B,1,1)
    var = jnp.mean(jnp.square(x_tok - mean), axis=(1, 2), keepdims=True)
    rstd = lax.rsqrt(var + 1e-6)
    gn_scale = (rstd * params["gn_g"][None]).astype(jnp.float32)         # (B,1,C)
    gn_shift = (params["gn_b"][None] - mean * gn_scale).astype(jnp.float32)

    bf16 = jnp.bfloat16
    w_in = params["w_in"].astype(bf16)                                   # (C, D)
    # Fused QKV; fold the attention scale into the bias-free q projection.
    wqkv = jnp.concatenate(
        [params["wq"] * (d_head ** -0.5), params["wk"], params["wv"]],
        axis=1).astype(bf16)                                             # (D, 3D)
    wo_h = params["wo"].reshape(n_heads, d_head, inner).astype(bf16)     # (H, dh, D)
    wff1 = params["wff1"].astype(bf16)                                   # (D, 8D)
    wff2 = params["wff2"].astype(bf16)                                   # (4D, D)
    w_out = params["w_out"].astype(bf16)                                 # (D, C)
    b_in, bo = params["b_in"], params["bo"]
    ln1_g, ln1_b = params["ln1_g"], params["ln1_b"]
    ln3_g, ln3_b = params["ln3_g"], params["ln3_b"]
    bff1, bff2, b_out = params["bff1"], params["bff2"], params["b_out"]

    # ---------------- kernel 1: prep (GroupNorm + proj_in + LN1 + QKV) ------
    prep = pl.pallas_call(
        functools.partial(prep_kernel, n_heads=n_heads, d_head=d_head),
        out_shape=(
            jax.ShapeDtypeStruct((b, n_tok, inner), jnp.float32),              # h
            jax.ShapeDtypeStruct((b, n_heads, n_tok, d_head), jnp.bfloat16),   # q
            jax.ShapeDtypeStruct((b, n_heads, n_tok, d_head), jnp.bfloat16),   # k
            jax.ShapeDtypeStruct((b, n_heads, n_tok, d_head), jnp.bfloat16),   # v
        ),
        grid_spec=pltpu.PrefetchScalarGridSpec(
            num_scalar_prefetch=0,
            grid=(b, np_),
            in_specs=[
                pl.BlockSpec((pl.Squeezed(), tp, c), lambda bi, qi: (bi, qi, 0)),
                pl.BlockSpec((pl.Squeezed(), 1, c), lambda bi, qi: (bi, 0, 0)),
                pl.BlockSpec((pl.Squeezed(), 1, c), lambda bi, qi: (bi, 0, 0)),
                _full_block(w_in), _full_block(b_in),
                _full_block(ln1_g), _full_block(ln1_b),
                _full_block(wqkv),
            ],
            out_specs=[
                pl.BlockSpec((pl.Squeezed(), tp, inner),
                             lambda bi, qi: (bi, qi, 0)),
                pl.BlockSpec((pl.Squeezed(), n_heads, tp, d_head),
                             lambda bi, qi: (bi, 0, qi, 0)),
                pl.BlockSpec((pl.Squeezed(), n_heads, tp, d_head),
                             lambda bi, qi: (bi, 0, qi, 0)),
                pl.BlockSpec((pl.Squeezed(), n_heads, tp, d_head),
                             lambda bi, qi: (bi, 0, qi, 0)),
            ],
        ),
        compiler_params=pltpu.CompilerParams(
            dimension_semantics=("parallel", "parallel"),
            vmem_limit_bytes=32 * 1024 * 1024),
    )
    h_tok, q_h, k_h, v_h = prep(x_tok, gn_scale, gn_shift,
                                w_in, b_in, ln1_g, ln1_b, wqkv)

    # ---------------- kernel 2: flash attention + FF + proj_out -------------
    attn_ff = pl.pallas_call(
        functools.partial(attn_ff_kernel, n_heads=n_heads, d_head=d_head),
        out_shape=jax.ShapeDtypeStruct((b, n_tok, c), jnp.float32),
        grid_spec=pltpu.PrefetchScalarGridSpec(
            num_scalar_prefetch=0,
            grid=(b, nq, nk),
            in_specs=[
                pl.BlockSpec((pl.Squeezed(), n_heads, tq, d_head),
                             lambda bi, qi, ki: (bi, 0, qi, 0)),   # q
                pl.BlockSpec((pl.Squeezed(), n_heads, tk, d_head),
                             lambda bi, qi, ki: (bi, 0, ki, 0)),   # k
                pl.BlockSpec((pl.Squeezed(), n_heads, tk, d_head),
                             lambda bi, qi, ki: (bi, 0, ki, 0)),   # v
                pl.BlockSpec((pl.Squeezed(), tq, inner),
                             lambda bi, qi, ki: (bi, qi, 0)),      # h residual
                pl.BlockSpec((pl.Squeezed(), tq, c),
                             lambda bi, qi, ki: (bi, qi, 0)),      # x residual
                _full_block(wo_h), _full_block(bo),
                _full_block(ln3_g), _full_block(ln3_b),
                _full_block(wff1), _full_block(bff1),
                _full_block(wff2), _full_block(bff2),
                _full_block(w_out), _full_block(b_out),
            ],
            out_specs=pl.BlockSpec((pl.Squeezed(), tq, c),
                                   lambda bi, qi, ki: (bi, qi, 0)),
            scratch_shapes=[
                pltpu.VMEM((n_heads, tq, 1), jnp.float32),         # m
                pltpu.VMEM((n_heads, tq, 1), jnp.float32),         # l
                pltpu.VMEM((n_heads, tq, d_head), jnp.float32),    # acc
            ],
        ),
        compiler_params=pltpu.CompilerParams(
            dimension_semantics=("parallel", "parallel", "arbitrary"),
            vmem_limit_bytes=32 * 1024 * 1024),
    )
    out_tok = attn_ff(q_h, k_h, v_h, h_tok, x_tok,
                      wo_h, bo, ln3_g, ln3_b,
                      wff1, bff1, wff2, bff2, w_out, b_out)

    # (B, N, C) -> NCHW
    return jnp.transpose(out_tok.reshape(b, hgt, wid, c), (0, 3, 1, 2))


# --------------------------------------------------------------------------
# pure-JAX f32 reference (for a loose sanity check against bf16 drift)
# --------------------------------------------------------------------------
def reference_forward(x_nchw, params, *, n_heads, d_head):
    b, c, hgt, wid = x_nchw.shape
    n = hgt * wid
    inner = n_heads * d_head
    x = jnp.transpose(x_nchw, (0, 2, 3, 1)).reshape(b, n, c).astype(jnp.float32)
    mean = jnp.mean(x, axis=(1, 2), keepdims=True)
    var = jnp.mean(jnp.square(x - mean), axis=(1, 2), keepdims=True)
    xn = (x - mean) * lax.rsqrt(var + 1e-6) * params["gn_g"][None] + params["gn_b"][None]
    h = xn @ params["w_in"] + params["b_in"]

    def ln(t, g, bb, eps=1e-5):
        mu = jnp.mean(t, -1, keepdims=True)
        vv = jnp.mean(jnp.square(t - mu), -1, keepdims=True)
        return (t - mu) * lax.rsqrt(vv + eps) * g + bb

    nrm = ln(h, params["ln1_g"], params["ln1_b"])
    q = nrm @ params["wq"]
    k = nrm @ params["wk"]
    v = nrm @ params["wv"]
    qh = q.reshape(b, n, n_heads, d_head).transpose(0, 2, 1, 3)
    kh = k.reshape(b, n, n_heads, d_head).transpose(0, 2, 1, 3)
    vh = v.reshape(b, n, n_heads, d_head).transpose(0, 2, 1, 3)
    s = jnp.einsum('bhqd,bhkd->bhqk', qh, kh) * (d_head ** -0.5)
    p = jax.nn.softmax(s, axis=-1)
    o = jnp.einsum('bhqk,bhkd->bhqd', p, vh).transpose(0, 2, 1, 3).reshape(b, n, inner)
    h = h + (o @ params["wo"] + params["bo"])
    n3 = ln(h, params["ln3_g"], params["ln3_b"])
    ff = n3 @ params["wff1"] + params["bff1"]
    a, g = jnp.split(ff, 2, axis=-1)
    ff = a * jax.nn.gelu(g, approximate=False)
    h = h + (ff @ params["wff2"] + params["bff2"])
    y = h @ params["w_out"] + params["b_out"] + x
    return jnp.transpose(y.reshape(b, hgt, wid, c), (0, 3, 1, 2))


# --------------------------------------------------------------------------
# parameter init (f32 master weights; wrapper casts matmul weights to bf16)
# --------------------------------------------------------------------------
def init_params(key, in_channels, n_heads, d_head):
    inner = n_heads * d_head
    ff_inner = inner * 4
    ks = jax.random.split(key, 16)
    s = 0.02

    def nrm(k, shape, scale=s):
        return (scale * jax.random.normal(k, shape)).astype(jnp.float32)

    return {
        "gn_g": jnp.ones((1, in_channels), jnp.float32) + nrm(ks[0], (1, in_channels), 0.1),
        "gn_b": nrm(ks[1], (1, in_channels), 0.1),
        "w_in": nrm(ks[2], (in_channels, inner)),
        "b_in": nrm(ks[3], (1, inner)),
        "ln1_g": jnp.ones((1, inner), jnp.float32),
        "ln1_b": jnp.zeros((1, inner), jnp.float32),
        "wq": nrm(ks[4], (inner, inner)),
        "wk": nrm(ks[5], (inner, inner)),
        "wv": nrm(ks[6], (inner, inner)),
        "wo": nrm(ks[7], (inner, inner)),
        "bo": nrm(ks[8], (1, inner)),
        "ln3_g": jnp.ones((1, inner), jnp.float32),
        "ln3_b": jnp.zeros((1, inner), jnp.float32),
        "wff1": nrm(ks[9], (inner, 2 * ff_inner)),
        "bff1": nrm(ks[10], (1, 2 * ff_inner)),
        "wff2": nrm(ks[11], (ff_inner, inner)),
        "bff2": nrm(ks[12], (1, inner)),
        "w_out": nrm(ks[13], (inner, in_channels)),
        "b_out": nrm(ks[14], (1, in_channels)),
    }


if __name__ == "__main__":
    # Small shapes consistent with the module (NCHW input).
    B, C, H, W = 2, 64, 16, 16
    N_HEADS, D_HEAD = 2, 64          # inner_dim = 128, N = 256 tokens

    key = jax.random.PRNGKey(0)
    kx, kp = jax.random.split(key)
    x = jax.random.normal(kx, (B, C, H, W), dtype=jnp.float32)
    params = init_params(kp, C, N_HEADS, D_HEAD)

    out = spatial_transformer(x, params, n_heads=N_HEADS, d_head=D_HEAD)
    jax.block_until_ready(out)
    assert out.shape == (B, C, H, W) and out.dtype == jnp.float32

    # Loose sanity check vs the f32 reference (bf16 MXU inputs => small drift).
    ref = reference_forward(x, params, n_heads=N_HEADS, d_head=D_HEAD)
    err = float(jnp.max(jnp.abs(out - ref)))
    assert err < 1e-1, f"max abs error vs f32 reference too large: {err}"

    print("KERNEL_OK")
</pallas_src>

<mosaic_0001>
module attributes {stable_mosaic.version = 11 : i64} {
  func.func @prep_kernel(%arg0: i32, %arg1: i32, %arg2: memref<1x256x64xf32, #tpu.memory_space<vmem>>, %arg3: memref<1x1x64xf32, #tpu.memory_space<vmem>>, %arg4: memref<1x1x64xf32, #tpu.memory_space<vmem>>, %arg5: memref<64x128xbf16, #tpu.memory_space<vmem>>, %arg6: memref<1x128xf32, #tpu.memory_space<vmem>>, %arg7: memref<1x128xf32, #tpu.memory_space<vmem>>, %arg8: memref<1x128xf32, #tpu.memory_space<vmem>>, %arg9: memref<128x384xbf16, #tpu.memory_space<vmem>>, %arg10: memref<1x256x128xf32, #tpu.memory_space<vmem>>, %arg11: memref<1x2x256x64xbf16, #tpu.memory_space<vmem>>, %arg12: memref<1x2x256x64xbf16, #tpu.memory_space<vmem>>, %arg13: memref<1x2x256x64xbf16, #tpu.memory_space<vmem>>) attributes {dimension_semantics = [#tpu.dimension_semantics<parallel>, #tpu.dimension_semantics<parallel>], iteration_bounds = array<i64: 2, 1>, scalar_prefetch = 0 : i64, scratch_operands = 0 : i64, tpu.core_type = #tpu.core_type<tc>, window_params = [{transform_indices = @transform_0, window_bounds = array<i64: 1, 256, 64>}, {transform_indices = @transform_1, window_bounds = array<i64: 1, 1, 64>}, {transform_indices = @transform_2, window_bounds = array<i64: 1, 1, 64>}, {pipeline_mode = #tpu.pipeline_mode<synchronous>, transform_indices = @transform_3, window_bounds = array<i64: 64, 128>}, {pipeline_mode = #tpu.pipeline_mode<synchronous>, transform_indices = @transform_4, window_bounds = array<i64: 1, 128>}, {pipeline_mode = #tpu.pipeline_mode<synchronous>, transform_indices = @transform_5, window_bounds = array<i64: 1, 128>}, {pipeline_mode = #tpu.pipeline_mode<synchronous>, transform_indices = @transform_6, window_bounds = array<i64: 1, 128>}, {pipeline_mode = #tpu.pipeline_mode<synchronous>, transform_indices = @transform_7, window_bounds = array<i64: 128, 384>}, {transform_indices = @transform_8, window_bounds = array<i64: 1, 256, 128>}, {transform_indices = @transform_9, window_bounds = array<i64: 1, 2, 256, 64>}, {transform_indices = @transform_10, window_bounds = array<i64: 1, 2, 256, 64>}, {transform_indices = @transform_11, window_bounds = array<i64: 1, 2, 256, 64>}]} {
    %c0 = arith.constant 0 : index
    %c0_0 = arith.constant 0 : index
    %c0_1 = arith.constant 0 : index
    %0 = vector.load %arg2[%c0, %c0_0, %c0_1] : memref<1x256x64xf32, #tpu.memory_space<vmem>>, vector<1x256x64xf32>
    %1 = vector.shape_cast %0 : vector<1x256x64xf32> to vector<256x64xf32>
    %c0_2 = arith.constant 0 : index
    %c0_3 = arith.constant 0 : index
    %c0_4 = arith.constant 0 : index
    %2 = vector.load %arg3[%c0_2, %c0_3, %c0_4] : memref<1x1x64xf32, #tpu.memory_space<vmem>>, vector<1x1x64xf32>
    %3 = vector.shape_cast %2 : vector<1x1x64xf32> to vector<1x64xf32>
    %4 = vector.broadcast %3 : vector<1x64xf32> to vector<256x64xf32>
    %5 = arith.mulf %1, %4 : vector<256x64xf32>
    %c0_5 = arith.constant 0 : index
    %c0_6 = arith.constant 0 : index
    %c0_7 = arith.constant 0 : index
    %6 = vector.load %arg4[%c0_5, %c0_6, %c0_7] : memref<1x1x64xf32, #tpu.memory_space<vmem>>, vector<1x1x64xf32>
    %7 = vector.shape_cast %6 : vector<1x1x64xf32> to vector<1x64xf32>
    %8 = vector.broadcast %7 : vector<1x64xf32> to vector<256x64xf32>
    %9 = arith.addf %5, %8 : vector<256x64xf32>
    %10 = arith.truncf %9 : vector<256x64xf32> to vector<256x64xbf16>
    %c0_8 = arith.constant 0 : index
    %c0_9 = arith.constant 0 : index
    %11 = vector.load %arg5[%c0_8, %c0_9] : memref<64x128xbf16, #tpu.memory_space<vmem>>, vector<64x128xbf16>
    %cst = arith.constant dense<0.000000e+00> : vector<256x128xf32>
    %12 = tpu.matmul %10, %11, %cst {dimension_numbers = #tpu.dot_dimension_numbers<[1], [0], [0], [1], [0, 0, 1, 1], [], []>} : vector<256x64xbf16>, vector<64x128xbf16>, vector<256x128xf32> -> vector<256x128xf32>
    %c0_10 = arith.constant 0 : index
    %c0_11 = arith.constant 0 : index
    %13 = vector.load %arg6[%c0_10, %c0_11] : memref<1x128xf32, #tpu.memory_space<vmem>>, vector<1x128xf32>
    %14 = vector.broadcast %13 : vector<1x128xf32> to vector<256x128xf32>
    %15 = arith.addf %12, %14 : vector<256x128xf32>
    %c0_12 = arith.constant 0 : index
    %c0_13 = arith.constant 0 : index
    %c0_14 = arith.constant 0 : index
    %16 = vector.load %arg10[%c0_12, %c0_13, %c0_14] : memref<1x256x128xf32, #tpu.memory_space<vmem>>, vector<1x256x128xf32>
    %17 = vector.shape_cast %16 : vector<1x256x128xf32> to vector<256x128xf32>
    %18 = vector.shape_cast %15 : vector<256x128xf32> to vector<1x256x128xf32>
    tpu.vector_store %arg10[%c0_12, %c0_13, %c0_14], %18 {strides = array<i32>} : memref<1x256x128xf32, #tpu.memory_space<vmem>>, vector<1x256x128xf32>,
    %c0_15 = arith.constant 0 : index
    %c0_16 = arith.constant 0 : index
    %19 = vector.load %arg7[%c0_15, %c0_16] : memref<1x128xf32, #tpu.memory_space<vmem>>, vector<1x128xf32>
    %c0_17 = arith.constant 0 : index
    %c0_18 = arith.constant 0 : index
    %20 = vector.load %arg8[%c0_17, %c0_18] : memref<1x128xf32, #tpu.memory_space<vmem>>, vector<1x128xf32>
    %cst_19 = arith.constant dense<0.000000e+00> : vector<256xf32>
    %21 = vector.multi_reduction <add>, %15, %cst_19 [1] : vector<256x128xf32> to vector<256xf32>
    %22 = vector.shape_cast %21 : vector<256xf32> to vector<256x1xf32>
    %cst_20 = arith.constant 1.280000e+02 : f32
    %23 = vector.broadcast %cst_20 : f32 to vector<256x1xf32>
    %24 = arith.divf %22, %23 : vector<256x1xf32>
    %25 = vector.broadcast %24 : vector<256x1xf32> to vector<256x128xf32>
    %26 = arith.subf %15, %25 : vector<256x128xf32>
    %27 = arith.mulf %26, %26 : vector<256x128xf32>
    %cst_21 = arith.constant dense<0.000000e+00> : vector<256xf32>
    %28 = vector.multi_reduction <add>, %27, %cst_21 [1] : vector<256x128xf32> to vector<256xf32>
    %29 = vector.shape_cast %28 : vector<256xf32> to vector<256x1xf32>
    %cst_22 = arith.constant 1.280000e+02 : f32
    %30 = vector.broadcast %cst_22 : f32 to vector<256x1xf32>
    %31 = arith.divf %29, %30 : vector<256x1xf32>
    %32 = vector.broadcast %24 : vector<256x1xf32> to vector<256x128xf32>
    %33 = arith.subf %15, %32 : vector<256x128xf32>
    %cst_23 = arith.constant 9.99999974E-6 : f32
    %34 = vector.broadcast %cst_23 : f32 to vector<256x1xf32>
    %35 = arith.addf %31, %34 : vector<256x1xf32>
    %36 = math.rsqrt %35 : vector<256x1xf32>
    %37 = vector.broadcast %36 : vector<256x1xf32> to vector<256x128xf32>
    %38 = arith.mulf %33, %37 : vector<256x128xf32>
    %39 = vector.broadcast %19 : vector<1x128xf32> to vector<256x128xf32>
    %40 = arith.mulf %38, %39 : vector<256x128xf32>
    %41 = vector.broadcast %20 : vector<1x128xf32> to vector<256x128xf32>
    %42 = arith.addf %40, %41 : vector<256x128xf32>
    %43 = arith.truncf %42 : vector<256x128xf32> to vector<256x128xbf16>
    %c0_24 = arith.constant 0 : index
    %c0_25 = arith.constant 0 : index
    %44 = vector.load %arg9[%c0_24, %c0_25] : memref<128x384xbf16, #tpu.memory_space<vmem>>, vector<128x384xbf16>
    %cst_26 = arith.constant dense<0.000000e+00> : vector<256x384xf32>
    %45 = tpu.matmul %43, %44, %cst_26 {dimension_numbers = #tpu.dot_dimension_numbers<[1], [0], [0], [1], [0, 0, 1, 1], [], []>} : vector<256x128xbf16>, vector<128x384xbf16>, vector<256x384xf32> -> vector<256x384xf32>
    %46 = vector.extract_strided_slice %45 {offsets = [0, 0], sizes = [256, 64], strides = [1, 1]} : vector<256x384xf32> to vector<256x64xf32>
    %47 = arith.truncf %46 : vector<256x64xf32> to vector<256x64xbf16>
    %c0_27 = arith.constant 0 : index
    %c0_28 = arith.constant 0 : index
    %c0_29 = arith.constant 0 : index
    %c0_30 = arith.constant 0 : index
    %48 = vector.load %arg11[%c0_27, %c0_28, %c0_29, %c0_30] : memref<1x2x256x64xbf16, #tpu.memory_space<vmem>>, vector<1x1x256x64xbf16>
    %49 = vector.shape_cast %48 : vector<1x1x256x64xbf16> to vector<256x64xbf16>
    %50 = vector.shape_cast %47 : vector<256x64xbf16> to vector<1x1x256x64xbf16>
    tpu.vector_store %arg11[%c0_27, %c0_28, %c0_29, %c0_30], %50 {strides = array<i32>} : memref<1x2x256x64xbf16, #tpu.memory_space<vmem>>, vector<1x1x256x64xbf16>,
    %51 = vector.extract_strided_slice %45 {offsets = [0, 128], sizes = [256, 64], strides = [1, 1]} : vector<256x384xf32> to vector<256x64xf32>
    %52 = arith.truncf %51 : vector<256x64xf32> to vector<256x64xbf16>
    %c0_31 = arith.constant 0 : index
    %c0_32 = arith.constant 0 : index
    %c0_33 = arith.constant 0 : index
    %c0_34 = arith.constant 0 : index
    %53 = vector.load %arg12[%c0_31, %c0_32, %c0_33, %c0_34] : memref<1x2x256x64xbf16, #tpu.memory_space<vmem>>, vector<1x1x256x64xbf16>
    %54 = vector.shape_cast %53 : vector<1x1x256x64xbf16> to vector<256x64xbf16>
    %55 = vector.shape_cast %52 : vector<256x64xbf16> to vector<1x1x256x64xbf16>
    tpu.vector_store %arg12[%c0_31, %c0_32, %c0_33, %c0_34], %55 {strides = array<i32>} : memref<1x2x256x64xbf16, #tpu.memory_space<vmem>>, vector<1x1x256x64xbf16>,
    %56 = vector.extract_strided_slice %45 {offsets = [0, 256], sizes = [256, 64], strides = [1, 1]} : vector<256x384xf32> to vector<256x64xf32>
    %57 = arith.truncf %56 : vector<256x64xf32> to vector<256x64xbf16>
    %c0_35 = arith.constant 0 : index
    %c0_36 = arith.constant 0 : index
    %c0_37 = arith.constant 0 : index
    %c0_38 = arith.constant 0 : index
    %58 = vector.load %arg13[%c0_35, %c0_36, %c0_37, %c0_38] : memref<1x2x256x64xbf16, #tpu.memory_space<vmem>>, vector<1x1x256x64xbf16>
    %59 = vector.shape_cast %58 : vector<1x1x256x64xbf16> to vector<256x64xbf16>
    %60 = vector.shape_cast %57 : vector<256x64xbf16> to vector<1x1x256x64xbf16>
    tpu.vector_store %arg13[%c0_35, %c0_36, %c0_37, %c0_38], %60 {strides = array<i32>} : memref<1x2x256x64xbf16, #tpu.memory_space<vmem>>, vector<1x1x256x64xbf16>,
    %61 = vector.extract_strided_slice %45 {offsets = [0, 64], sizes = [256, 64], strides = [1, 1]} : vector<256x384xf32> to vector<256x64xf32>
    %62 = arith.truncf %61 : vector<256x64xf32> to vector<256x64xbf16>
    %c0_39 = arith.constant 0 : index
    %c1 = arith.constant 1 : index
    %c0_40 = arith.constant 0 : index
    %c0_41 = arith.constant 0 : index
    %63 = vector.load %arg11[%c0_39, %c1, %c0_40, %c0_41] : memref<1x2x256x64xbf16, #tpu.memory_space<vmem>>, vector<1x1x256x64xbf16>
    %64 = vector.shape_cast %63 : vector<1x1x256x64xbf16> to vector<256x64xbf16>
    %65 = vector.shape_cast %62 : vector<256x64xbf16> to vector<1x1x256x64xbf16>
    tpu.vector_store %arg11[%c0_39, %c1, %c0_40, %c0_41], %65 {strides = array<i32>} : memref<1x2x256x64xbf16, #tpu.memory_space<vmem>>, vector<1x1x256x64xbf16>,
    %66 = vector.extract_strided_slice %45 {offsets = [0, 192], sizes = [256, 64], strides = [1, 1]} : vector<256x384xf32> to vector<256x64xf32>
    %67 = arith.truncf %66 : vector<256x64xf32> to vector<256x64xbf16>
    %c0_42 = arith.constant 0 : index
    %c1_43 = arith.constant 1 : index
    %c0_44 = arith.constant 0 : index
    %c0_45 = arith.constant 0 : index
    %68 = vector.load %arg12[%c0_42, %c1_43, %c0_44, %c0_45] : memref<1x2x256x64xbf16, #tpu.memory_space<vmem>>, vector<1x1x256x64xbf16>
    %69 = vector.shape_cast %68 : vector<1x1x256x64xbf16> to vector<256x64xbf16>
    %70 = vector.shape_cast %67 : vector<256x64xbf16> to vector<1x1x256x64xbf16>
    tpu.vector_store %arg12[%c0_42, %c1_43, %c0_44, %c0_45], %70 {strides = array<i32>} : memref<1x2x256x64xbf16, #tpu.memory_space<vmem>>, vector<1x1x256x64xbf16>,
    %71 = vector.extract_strided_slice %45 {offsets = [0, 320], sizes = [256, 64], strides = [1, 1]} : vector<256x384xf32> to vector<256x64xf32>
    %72 = arith.truncf %71 : vector<256x64xf32> to vector<256x64xbf16>
    %c0_46 = arith.constant 0 : index
    %c1_47 = arith.constant 1 : index
    %c0_48 = arith.constant 0 : index
    %c0_49 = arith.constant 0 : index
    %73 = vector.load %arg13[%c0_46, %c1_47, %c0_48, %c0_49] : memref<1x2x256x64xbf16, #tpu.memory_space<vmem>>, vector<1x1x256x64xbf16>
    %74 = vector.shape_cast %73 : vector<1x1x256x64xbf16> to vector<256x64xbf16>
    %75 = vector.shape_cast %72 : vector<256x64xbf16> to vector<1x1x256x64xbf16>
    tpu.vector_store %arg13[%c0_46, %c1_47, %c0_48, %c0_49], %75 {strides = array<i32>} : memref<1x2x256x64xbf16, #tpu.memory_space<vmem>>, vector<1x1x256x64xbf16>,
    return
  }
  func.func @transform_0(%arg0: i32, %arg1: i32) -> (i32, i32, i32) {
    %c0_i32 = arith.constant 0 : i32
    %c0_i32_0 = arith.constant 0 : i32
    return %arg0, %arg1, %c0_i32 : i32, i32, i32
  }
  func.func @transform_1(%arg0: i32, %arg1: i32) -> (i32, i32, i32) {
    %c0_i32 = arith.constant 0 : i32
    %c0_i32_0 = arith.constant 0 : i32
    %c0_i32_1 = arith.constant 0 : i32
    return %arg0, %c0_i32, %c0_i32_0 : i32, i32, i32
  }
  func.func @transform_2(%arg0: i32, %arg1: i32) -> (i32, i32, i32) {
    %c0_i32 = arith.constant 0 : i32
    %c0_i32_0 = arith.constant 0 : i32
    %c0_i32_1 = arith.constant 0 : i32
    return %arg0, %c0_i32, %c0_i32_0 : i32, i32, i32
  }
  func.func @transform_3(%arg0: i32, %arg1: i32) -> (i32, i32) {
    %c0_i32 = arith.constant 0 : i32
    %c0_i32_0 = arith.constant 0 : i32
    %c0_i32_1 = arith.constant 0 : i32
    return %c0_i32, %c0_i32_0 : i32, i32
  }
  func.func @transform_4(%arg0: i32, %arg1: i32) -> (i32, i32) {
    %c0_i32 = arith.constant 0 : i32
    %c0_i32_0 = arith.constant 0 : i32
    %c0_i32_1 = arith.constant 0 : i32
    return %c0_i32, %c0_i32_0 : i32, i32
  }
  func.func @transform_5(%arg0: i32, %arg1: i32) -> (i32, i32) {
    %c0_i32 = arith.constant 0 : i32
    %c0_i32_0 = arith.constant 0 : i32
    %c0_i32_1 = arith.constant 0 : i32
    return %c0_i32, %c0_i32_0 : i32, i32
  }
  func.func @transform_6(%arg0: i32, %arg1: i32) -> (i32, i32) {
    %c0_i32 = arith.constant 0 : i32
    %c0_i32_0 = arith.constant 0 : i32
    %c0_i32_1 = arith.constant 0 : i32
    return %c0_i32, %c0_i32_0 : i32, i32
  }
  func.func @transform_7(%arg0: i32, %arg1: i32) -> (i32, i32) {
    %c0_i32 = arith.constant 0 : i32
    %c0_i32_0 = arith.constant 0 : i32
    %c0_i32_1 = arith.constant 0 : i32
    return %c0_i32, %c0_i32_0 : i32, i32
  }
  func.func @transform_8(%arg0: i32, %arg1: i32) -> (i32, i32, i32) {
    %c0_i32 = arith.constant 0 : i32
    %c0_i32_0 = arith.constant 0 : i32
    return %arg0, %arg1, %c0_i32 : i32, i32, i32
  }
  func.func @transform_9(%arg0: i32, %arg1: i32) -> (i32, i32, i32, i32) {
    %c0_i32 = arith.constant 0 : i32
    %c0_i32_0 = arith.constant 0 : i32
    %c0_i32_1 = arith.constant 0 : i32
    return %arg0, %c0_i32, %arg1, %c0_i32_0 : i32, i32, i32, i32
  }
  func.func @transform_10(%arg0: i32, %arg1: i32) -> (i32, i32, i32, i32) {
    %c0_i32 = arith.constant 0 : i32
    %c0_i32_0 = arith.constant 0 : i32
    %c0_i32_1 = arith.constant 0 : i32
    return %arg0, %c0_i32, %arg1, %c0_i32_0 : i32, i32, i32, i32
  }
  func.func @transform_11(%arg0: i32, %arg1: i32) -> (i32, i32, i32, i32) {
    %c0_i32 = arith.constant 0 : i32
    %c0_i32_0 = arith.constant 0 : i32
    %c0_i32_1 = arith.constant 0 : i32
    return %arg0, %c0_i32, %arg1, %c0_i32_0 : i32, i32, i32, i32
  }
}

</mosaic_0001>

<bundles_post_ra>
// kernel: tpu_custom_call.1
= control target key start
LH: loop header
LB: loop body
LE: loop exit
PB: predicated region body
PF: predicated region fallthrough
CT: control target
= control target key end

     0   :  { %s5346_s0 = inlined_call_operand.vmem [shape: f32[2,256,64], index: 0, kind: input, shape index: {}]   ;;  %s5347_s1 = inlined_call_operand.vmem [shape: f32[2,1,64], index: 1, kind: input, shape index: {}]   ;;  %s5348_s2 = inlined_call_operand.vmem [shape: f32[2,1,64], index: 2, kind: input, shape index: {}]   ;;  %s5349_s3 = inlined_call_operand.vmem [shape: bf16[64,128], index: 3, kind: input, shape index: {}]   ;;  %s5350_s4 = inlined_call_operand.vmem [shape: f32[1,128], index: 4, kind: input, shape index: {}]   ;;  %s5351_s5 = inlined_call_operand.vmem [shape: f32[1,128], index: 5, kind: input, shape index: {}]   ;;  %s5352_s6 = inlined_call_operand.vmem [shape: f32[1,128], index: 6, kind: input, shape index: {}]   ;;  %s5353_s7 = inlined_call_operand.vmem [shape: bf16[128,384], index: 7, kind: input, shape index: {}]   ;;  %s5354_s8 = inlined_call_operand.hbm [shape: f32[2,256,128], index: 8, kind: output, shape index: {0}]   ;;  %s5355_s9 = inlined_call_operand.vmem [shape: bf16[2,2,256,64], index: 9, kind: output, shape index: {1}]   ;;  %s5356_s10 = inlined_call_operand.vmem [shape: bf16[2,2,256,64], index: 10, kind: output, shape index: {2}]   ;;  %s5357_s11 = inlined_call_operand.vmem [shape: bf16[2,2,256,64], index: 11, kind: output, shape index: {3}]  }
   0x1   :  { %5362 = sst [smem:[#allocation8_spill]] %s5346_s0 }
   0x2   :  { %5363 = sst [smem:[#allocation9_spill]] %s5347_s1 }
   0x3   :  { %17 = vsyncpa [#allocation3], 0 }
   0x4   :  { %19 = vsyncpa [#allocation3 + $0x1], 0  ;;  %s3809_s17 = smov 0   ;;  %s3811_s18 = smov 0  }
   0x5   :  { %s3813_s19 = smov 0   ;;  %s3815_s20 = smov 0  }
   0x6   :  { %s3817_s21 = smov 0   ;;  %s3819_s22 = smov 0  }
   0x7 LB: > { %5364 = sst [smem:[#allocation5_spill]] %s3738_s21  ;;  %s3014_s23 = sadd.s32 4294967295, %s3742_s22   ;;  %s3742_s22 = sphi %s3819_s22, %s25_s22   ;;  %s3738_s21 = sphi %s3817_s21, %s5374_s21   ;;  %s3734_s20 = sphi %s3815_s20, %s5373_s20   ;;  %s3730_s19 = sphi %s3813_s19, %s5377_s19   ;;  %s3726_s18 = sphi %s3811_s18, %s5376_s18   ;;  %s3722_s17 = sphi %s3809_s17, %s5375_s17  }
   0x8   : > { %s3015_s24 = sadd.s32 4294967294, %s3742_s22   ;;  %s37_s25 = sadd.s32 1, %s3738_s21 }
   0x9   : > { %s231_s26 = sadd.s32 1, %s3730_s19  ;;  %p39_p0 = scmp.ge.s32.totalorder %s37_s25, 2 }
   0xa   : > { %p241_p1 = scmp.ne.s32.totalorder %s3730_s19, %s3726_s18  ;;  %p242_p2 = scmp.eq.s32.totalorder %s3014_s23, 1 }
   0xb   : > { %p247_p3 = scmp.ne.s32.totalorder %s3726_s18, %s3722_s17  ;;  %s5379_s25 = smov (%p39_p0, %s37_s25), 0 }
   0xc   : > { %5365 = sst [smem:[#allocation6_spill]] %s5379_s25  ;;  %p3849_p4 = por %p242_p2, %p241_p1 }
   0xd   : > { %p248_p5 = scmp.eq.s32.totalorder %s3015_s24, 1  ;;  %s226_s28 = ssub.s32 %s3738_s21, %s5379_s25 }
   0xe   : > { %p3018_p6 = scmp.ge.s32.totalorder %s3742_s22, 1  ;;  %p229_p7 = scmp.eq.s32.totalorder %s226_s28, 0 }
   0xf   : > { %p3856_p8 = por %p248_p5, %p247_p3  ;;  %p390_p9 = scmp.lt.s32.totalorder %s3742_s22, 3 }
  0x10   : > { %s3862_s30 = scalar_select %p229_p7, %s3730_s19, %s231_s26  }
  0x11   : > { %p391_p10 = pnand %p3018_p6, %p390_p9 }
  0x12   : > { %5368 = sst [smem:[#allocation7_spill]] %s3862_s30  ;;  %p468_p11 = scmp.lt.s32.totalorder (!%p391_p10), %s3734_s20, 1 }
  0x13   : > { %394 = sbr.rel (%p391_p10) target bundleno = 1137 (0x471), region = 52  ;;  %s5369_s1 = sld [smem:[#allocation9_spill]] (!%p391_p10) }
  0x14   : > { %s5370_s0 = sld [smem:[#allocation8_spill]] (!%p391_p10)  ;;  %s431_s30 = sand.u32 (!%p391_p10), 1, %s3726_s18  }
  0x15   : > { %s5360_s21 = smov (!%p391_p10), 64  }
  0x18   : > { %v3566_v0 = vld [vmem:[%s5349_s3 + $0x18] sm:$0xff]   ;;  %v3567_v1 = vld [vmem:[%s5349_s3 + $0x10] sm:$0xff]   ;;  %s469_s16 = scalar_select %p468_p11, %s3734_s20, 1  ;;  %v3568_v2 = vld [vmem:[%s5349_s3 + $0x8] sm:$0xff]   ;;  %vm680_vm0 = vcmask 523264   ;;  %vm2011_vm1 = vcmask 519168  }
  0x19   : > { %3419 = vmatprep.subr.bf16.mxu0 %v3566_v0  ;;  %v3569_v12 = vld [vmem:[%s5349_s3] sm:$0xff]  }
  0x1a   : > { %3420 = vmatpush3.bf16.msra.mxu0 %v3566_v0  ;;  %s3875_s26 = sshll.u32 %s469_s16, 8  ;;  %s479_s13 = scalar_lea.vmem %s5369_s1, %s469_s16 }
  0x1b   : > { %3421 = vmatprep.subr.bf16.mxu0 %v3567_v1  ;;  %s3884_s14 = scalar_lea.vmem %s5370_s0, %s3875_s26  ;;  %s482_s23 = scalar_lea.vmem %s5348_s2, %s469_s16  ;;  %v3889_v3 = vld [vmem:[%s479_s13] ss:$0 sm:$0xff] }
  0x1c   : > { %v515_v4 = vld [vmem:[%s3884_s14] sm:$0xff]  ;;  %v516_v5 = vld [vmem:[%s3884_s14 + $0x8] sm:$0xff]  ;;  %v517_v9 = vld [vmem:[%s3884_s14 + $0x10] sm:$0xff]  ;;  %s3019_s16 = sshll.u32 %s431_s30, 8  ;;  %s4568_s13 = scalar_lea.vmem %s5355_s9, %s3875_s26 }
  0x1d   : > { %v3893_v6 = vld [vmem:[%s482_s23] ss:$0 sm:$0xff]  ;;  %v554_v7 = vmul.f32 %v3889_v3, %v515_v4  ;;  %v555_v8 = vmul.f32 %v3889_v3, %v516_v5  ;;  %v518_v10 = vld [vmem:[%s3884_s14 + $0x18] sm:$0xff]  ;;  %v556_v13 = vmul.f32 %v3889_v3, %v517_v9  ;;  %v520_v15 = vld [vmem:[%s3884_s14 + $0x28] sm:$0xff]  ;;  %s4019_s12 = scalar_lea.vmem [#allocation2], %s3019_s16  ;;  %s4574_s23 = scalar_lea.vmem %s5356_s10, %s3875_s26 }
  0x1e   : > { %3422 = vmatpush3.bf16.msra.mxu0 %v3567_v1  ;;  %v519_v11 = vld [vmem:[%s3884_s14 + $0x20] sm:$0xff]  ;;  %v557_v14 = vmul.f32 %v3889_v3, %v518_v10  ;;  %v559_v19 = vmul.f32 %v3889_v3, %v520_v15  ;;  %v521_v25 = vld [vmem:[%s3884_s14 + $0x30] sm:$0xff]  ;;  %v522_v26 = vld [vmem:[%s3884_s14 + $0x38] sm:$0xff]  ;;  %s4588_s24 = scalar_lea.vmem %s5357_s11, %s3875_s26  ;;  %s3374_s26 = sshll.u32 %s3734_s20, 12 }
  0x1f   : > { %3423 = vmatprep.subr.bf16.mxu0 %v3568_v2  ;;  %v558_v16 = vmul.f32 %v3889_v3, %v519_v11  ;;  %v593_v17 = vadd.f32 %v3893_v6, %v554_v7  ;;  %v594_v18 = vadd.f32 %v3893_v6, %v555_v8  ;;  %v595_v20 = vadd.f32 %v3893_v6, %v556_v13  ;;  %v523_v27 = vld [vmem:[%s3884_s14 + $0x40] sm:$0xff]  ;;  %v524_v28 = vld [vmem:[%s3884_s14 + $0x48] sm:$0xff]  ;;  %v525_v35 = vld [vmem:[%s3884_s14 + $0x50] sm:$0xff]  ;;  %s2794_s28 = sshll.u32 %s4019_s12, 4  ;;  %s5173_s25 = scalar_lea.hbm %s5354_s8, %s3374_s26  ;;  %s5177_s28 = int_to_ptr.vmem [resolvable:$true] %s2794_s28 }
  0x20   : > { %v596_v21 = vadd.f32 %v3893_v6, %v557_v14  ;;  %v598_v24 = vadd.f32 %v3893_v6, %v559_v19  ;;  %v560_v30 = vmul.f32 %v3889_v3, %v521_v25  ;;  %v561_v31 = vmul.f32 %v3889_v3, %v522_v26  ;;  %v526_v36 = vld [vmem:[%s3884_s14 + $0x58] sm:$0xff]  ;;  %v527_v39 = vld [vmem:[%s3884_s14 + $0x60] sm:$0xff]  ;;  %v528_v40 = vld [vmem:[%s3884_s14 + $0x68] sm:$0xff]  ;;  %s5183_s16 = scalar_lea.sflag [#allocation3], %s431_s30  ;;  %s3666_s20 = scalar_lea.vmem %s5177_s28, 4096 }
  0x21   : > { %v625_v22 = vpack.c.bf16 %v594_v18, %v593_v17  ;;  %v597_v23 = vadd.f32 %v3893_v6, %v558_v16  ;;  %v562_v33 = vmul.f32 %v3889_v3, %v523_v27  ;;  %v563_v34 = vmul.f32 %v3889_v3, %v524_v28  ;;  %v529_v53 = vld [vmem:[%s3884_s14 + $0x70] sm:$0xff]  ;;  %v530_v54 = vld [vmem:[%s3884_s14 + $0x78] sm:$0xff]  ;;  %v531_v55 = vld [vmem:[%s3884_s14 + $0x80] sm:$0xff]  ;;  %p3667_p12 = scmp.ne.s32.totalorder %s5177_s28, %s3666_s20 }
  0x22   : > { %3424 = vmatpush3.bf16.msra.mxu0 %v3568_v2  ;;  %v626_v29 = vpack.c.bf16 %v596_v21, %v595_v20  ;;  %v599_v37 = vadd.f32 %v3893_v6, %v560_v30  ;;  %v600_v38 = vadd.f32 %v3893_v6, %v561_v31  ;;  %v564_v44 = vmul.f32 %v3889_v3, %v525_v35  ;;  %v532_v56 = vld [vmem:[%s3884_s14 + $0x88] sm:$0xff]  ;;  %v533_v4 = vld [vmem:[%s3884_s14 + $0x90] sm:$0xff]  ;;  %v534_v5 = vld [vmem:[%s3884_s14 + $0x98] sm:$0xff] }
  0x23   : > { %3425 = vmatprep.subr.bf16.mxu0 %v3569_v12  ;;  %3427 = vmatprep.mubr.msk.bf16.mxu0 %vm680_vm0, %v625_v22  ;;  %v627_v32 = vpack.c.bf16 %v598_v24, %v597_v23  ;;  %v601_v41 = vadd.f32 %v3893_v6, %v562_v33  ;;  %v602_v42 = vadd.f32 %v3893_v6, %v563_v34  ;;  %v535_v7 = vld [vmem:[%s3884_s14 + $0xa0] sm:$0xff]  ;;  %v536_v8 = vld [vmem:[%s3884_s14 + $0xa8] sm:$0xff]  ;;  %v537_v19 = vld [vmem:[%s3884_s14 + $0xb0] sm:$0xff]  ;;  %p3668_p13 = pnand %p3667_p12, %p3849_p4 }
  0x24   : > { %v628_v43 = vpack.c.bf16 %v600_v38, %v599_v37  ;;  %v565_v45 = vmul.f32 %v3889_v3, %v526_v36  ;;  %v566_v47 = vmul.f32 %v3889_v3, %v527_v39  ;;  %v567_v48 = vmul.f32 %v3889_v3, %v528_v40  ;;  %v538_v20 = vld [vmem:[%s3884_s14 + $0xb8] sm:$0xff]  ;;  %v539_v21 = vld [vmem:[%s3884_s14 + $0xc0] sm:$0xff]  ;;  %v540_v22 = vld [vmem:[%s3884_s14 + $0xc8] sm:$0xff] }
  0x25   : > { %v629_v46 = vpack.c.bf16 %v602_v42, %v601_v41  ;;  %v603_v49 = vadd.f32 %v3893_v6, %v564_v44  ;;  %v568_v58 = vmul.f32 %v3889_v3, %v529_v53  ;;  %v569_v59 = vmul.f32 %v3889_v3, %v530_v54  ;;  %v541_v33 = vld [vmem:[%s3884_s14 + $0xd0] sm:$0xff]  ;;  %v542_v34 = vld [vmem:[%s3884_s14 + $0xd8] sm:$0xff]  ;;  %v543_v35 = vld [vmem:[%s3884_s14 + $0xe0] sm:$0xff]  ;;  %p3669_p0 = pneg %p3668_p13 }
  0x26   : > { %3426 = vmatpush3.bf16.msra.mxu0 %v3569_v12  ;;  %v604_v50 = vadd.f32 %v3893_v6, %v565_v45  ;;  %v605_v51 = vadd.f32 %v3893_v6, %v566_v47  ;;  %v606_v52 = vadd.f32 %v3893_v6, %v567_v48  ;;  %v570_v61 = vmul.f32 %v3889_v3, %v531_v55  ;;  %v544_v36 = vld [vmem:[%s3884_s14 + $0xe8] sm:$0xff]  ;;  %v545_v47 = vld [vmem:[%s3884_s14 + $0xf0] sm:$0xff]  ;;  %v546_v48 = vld [vmem:[%s3884_s14 + $0xf8] sm:$0xff] }
  0x27   : > { %v571_v62 = vmul.f32 %v3889_v3, %v532_v56  ;;  %v607_v63 = vadd.f32 %v3893_v6, %v568_v58  ;;  %v608_v0 = vadd.f32 %v3893_v6, %v569_v59  ;;  %v572_v10 = vmul.f32 %v3889_v3, %v533_v4  ;;  %v4014_v56 = vld [vmem:[%s5350_s4] ss:$0 sm:$0xff] }
  0x28   : > { %v630_v57 = vpack.c.bf16 %v604_v50, %v603_v49  ;;  %v631_v60 = vpack.c.bf16 %v606_v52, %v605_v51  ;;  %v609_v1 = vadd.f32 %v3893_v6, %v570_v61  ;;  %v573_v11 = vmul.f32 %v3889_v3, %v534_v5 }
  0x29   : > { %3428 = vmatmul.mubr.msk.bf16.vlgmr.msra.gmra.mxu0 %vm680_vm0, %v626_v29  ;;  %v610_v2 = vadd.f32 %v3893_v6, %v571_v62  ;;  %v632_v9 = vpack.c.bf16 %v608_v0, %v607_v63  ;;  %v574_v13 = vmul.f32 %v3889_v3, %v535_v7  ;;  %v575_v14 = vmul.f32 %v3889_v3, %v536_v8 }
  0x2a   : > { %3431 = vmatprep.mubr.msk.bf16.mxu0 %vm680_vm0, %v627_v32  ;;  %v611_v15 = vadd.f32 %v3893_v6, %v572_v10  ;;  %v612_v16 = vadd.f32 %v3893_v6, %v573_v11  ;;  %v576_v24 = vmul.f32 %v3889_v3, %v537_v19  ;;  %v577_v25 = vmul.f32 %v3889_v3, %v538_v20 }
  0x2b   : > { %v633_v12 = vpack.c.bf16 %v610_v2, %v609_v1  ;;  %v613_v17 = vadd.f32 %v3893_v6, %v574_v13  ;;  %v614_v18 = vadd.f32 %v3893_v6, %v575_v14  ;;  %v578_v27 = vmul.f32 %v3889_v3, %v539_v21 }
  0x2c   : > { %v634_v23 = vpack.c.bf16 %v612_v16, %v611_v15  ;;  %v579_v28 = vmul.f32 %v3889_v3, %v540_v22  ;;  %v615_v29 = vadd.f32 %v3893_v6, %v576_v24  ;;  %v616_v30 = vadd.f32 %v3893_v6, %v577_v25 }
  0x2d   : > { %v635_v26 = vpack.c.bf16 %v614_v18, %v613_v17  ;;  %v617_v31 = vadd.f32 %v3893_v6, %v578_v27  ;;  %v580_v38 = vmul.f32 %v3889_v3, %v541_v33  ;;  %v581_v39 = vmul.f32 %v3889_v3, %v542_v34 }
  0x2e   : > { %v618_v32 = vadd.f32 %v3893_v6, %v579_v28  ;;  %v636_v37 = vpack.c.bf16 %v616_v30, %v615_v29  ;;  %v582_v41 = vmul.f32 %v3889_v3, %v543_v35  ;;  %v583_v42 = vmul.f32 %v3889_v3, %v544_v36 }
  0x2f   : > { %v620_v44 = vadd.f32 %v3893_v6, %v581_v39  ;;  %v584_v50 = vmul.f32 %v3889_v3, %v545_v47  ;;  %v585_v51 = vmul.f32 %v3889_v3, %v546_v48 }
  0x30   : > { %v637_v40 = vpack.c.bf16 %v618_v32, %v617_v31  ;;  %v621_v45 = vadd.f32 %v3893_v6, %v582_v41 }
  0x31   : > { %3432 = vmatmul.mubr.msk.bf16.gmra.mxu0 %vm680_vm0, %v628_v43  ;;  %v619_v43 = vadd.f32 %v3893_v6, %v580_v38  ;;  %v623_v53 = vadd.f32 %v3893_v6, %v584_v50  ;;  %v624_v54 = vadd.f32 %v3893_v6, %v585_v51 }
  0x32   : > { %3435 = vmatprep.mubr.msk.bf16.mxu0 %vm680_vm0, %v629_v46  ;;  %v622_v46 = vadd.f32 %v3893_v6, %v583_v42 }
  0x33   : > { %v638_v49 = vpack.c.bf16 %v620_v44, %v619_v43  ;;  %v640_v55 = vpack.c.bf16 %v624_v54, %v623_v53 }
  0x34   : > { %v639_v52 = vpack.c.bf16 %v622_v46, %v621_v45 }
  0x39   : > { %3436 = vmatmul.mubr.msk.bf16.gmra.mxu0 %vm680_vm0, %v630_v57 }
  0x3a   : > { %3439 = vmatprep.mubr.msk.bf16.mxu0 %vm680_vm0, %v631_v60 }
  0x41   : > { %3440 = vmatmul.mubr.msk.bf16.gmra.mxu0 %vm680_vm0, %v632_v9 }
  0x42   : > { %3443 = vmatprep.mubr.msk.bf16.mxu0 %vm680_vm0, %v633_v12 }
  0x49   : > { %3444 = vmatmul.mubr.msk.bf16.gmra.mxu0 %vm680_vm0, %v634_v23 }
  0x4a   : > { %3447 = vmatprep.mubr.msk.bf16.mxu0 %vm680_vm0, %v635_v26 }
  0x51   : > { %3448 = vmatmul.mubr.msk.bf16.gmra.mxu0 %vm680_vm0, %v636_v37 }
  0x52   : > { %3451 = vmatprep.mubr.msk.bf16.mxu0 %vm680_vm0, %v637_v40 }
  0x59   : > { %3452 = vmatmul.mubr.msk.bf16.gmra.mxu0 %vm680_vm0, %v638_v49 }
  0x5a   : > { %3455 = vmatprep.mubr.msk.bf16.mxu0 %vm680_vm0, %v639_v52 }
  0x61   : > { %3456 = vmatmul.mubr.msk.bf16.gmra.mxu0 %vm680_vm0, %v640_v55 }
  0xe9   : > { %v3429_v3 = vpop.f32.mrf.mxu0 }
  0xea   : > { %v4017_v57 = vadd.f32 %v3429_v3, %v4014_v56 }
  0xeb   : > { %v763_v58 = vpop.f32.mrf.mxu0 }
  0xec   : > { %892 = vst [vmem:[%s4019_s12 + $0x10] sm:$0xff] %v4017_v57  ;;  %v4024_v6 = vadd.f32 %v4014_v56, %v763_v58  ;;  %928 = vadd.xlane.f32.xlu1 %v4017_v57  ;;  %v3570_v58 = vld [vmem:[%s5353_s7 + $0xac] ss:$12 sps:$4 sm:$0xff]  }
  0xed   : > { %v3430_v59 = vpop.f32.mrf.mxu0  ;;  %1529 = vmatprep.subr.bf16.mxu1 %v3570_v58  ;;  %v3582_v58 = vld [vmem:[%s5353_s7 + $0x98] ss:$12 sps:$4 sm:$0xff]  }
  0xee   : > { %890 = vst [vmem:[%s4019_s12] sm:$0xff] %v4024_v6  ;;  %v4030_v60 = vadd.f32 %v3430_v59, %v4014_v56  ;;  %924 = vadd.xlane.f32.xlu0 %v4024_v6  ;;  %v3572_v59 = vld [vmem:[%s5353_s7 + $0xa8] ss:$12 sps:$4 sm:$0xff]  }
  0xef   : > { %v766_v61 = vpop.f32.mrf.mxu0  ;;  %1530 = vmatpush1.bf16.msra.mxu1 %v3572_v59  ;;  %v3583_v59 = vld [vmem:[%s5353_s7 + $0x60] ss:$12 sps:$4 sm:$0xff]  }
  0xf0   : > { %893 = vst [vmem:[%s4019_s12 + $0x18] sm:$0xff] %v4030_v60  ;;  %v4036_v62 = vadd.f32 %v4014_v56, %v766_v61  ;;  %930 = vadd.xlane.f32.xlu1 %v4030_v60 }
  0xf1   : > { %v3433_v63 = vpop.f32.mrf.mxu0 }
  0xf2   : > { %891 = vst [vmem:[%s4019_s12 + $0x8] sm:$0xff] %v4036_v62  ;;  %v4042_v0 = vadd.f32 %v3433_v63, %v4014_v56  ;;  %926 = vadd.xlane.f32.xlu0 %v4036_v62 }
  0xf3   : > { %v779_v1 = vpop.f32.mrf.mxu0 }
  0xf4   : > { %896 = vst [vmem:[%s4019_s12 + $0x30] sm:$0xff] %v4042_v0  ;;  %v4048_v2 = vadd.f32 %v4014_v56, %v779_v1 }
  0xf5   : > { %v3434_v4 = vpop.f32.mrf.mxu0 }
  0xf6   : > { %894 = vst [vmem:[%s4019_s12 + $0x20] sm:$0xff] %v4048_v2  ;;  %v4053_v5 = vadd.f32 %v3434_v4, %v4014_v56  ;;  %932 = vadd.xlane.f32.xlu0 %v4048_v2 }
  0xf7   : > { %v782_v7 = vpop.f32.mrf.mxu0 }
  0xf8   : > { %897 = vst [vmem:[%s4019_s12 + $0x38] sm:$0xff] %v4053_v5  ;;  %v4059_v8 = vadd.f32 %v4014_v56, %v782_v7 }
  0xf9   : > { %v3437_v9 = vpop.f32.mrf.mxu0 }
  0xfa   : > { %895 = vst [vmem:[%s4019_s12 + $0x28] sm:$0xff] %v4059_v8  ;;  %v4064_v10 = vadd.f32 %v3437_v9, %v4014_v56  ;;  %934 = vadd.xlane.f32.xlu1 %v4059_v8  ;;  %936 = vadd.xlane.f32.xlu0 %v4042_v0 }
  0xfb   : > { %v795_v11 = vpop.f32.mrf.mxu0 }
  0xfc   : > { %900 = vst [vmem:[%s4019_s12 + $0x50] sm:$0xff] %v4064_v10  ;;  %v4071_v12 = vadd.f32 %v4014_v56, %v795_v11 }
  0xfd   : > { %v3438_v13 = vpop.f32.mrf.mxu0 }
  0xfe   : > { %898 = vst [vmem:[%s4019_s12 + $0x40] sm:$0xff] %v4071_v12  ;;  %v4076_v14 = vadd.f32 %v3438_v13, %v4014_v56  ;;  %938 = vadd.xlane.f32.xlu1 %v4053_v5  ;;  %940 = vadd.xlane.f32.xlu0 %v4071_v12 }
  0xff   : > { %v798_v15 = vpop.f32.mrf.mxu0 }
 0x100   : > { %901 = vst [vmem:[%s4019_s12 + $0x58] sm:$0xff] %v4076_v14  ;;  %v4083_v16 = vadd.f32 %v4014_v56, %v798_v15 }
 0x101   : > { %v3441_v17 = vpop.f32.mrf.mxu0 }
 0x102   : > { %899 = vst [vmem:[%s4019_s12 + $0x48] sm:$0xff] %v4083_v16  ;;  %v4088_v18 = vadd.f32 %v3441_v17, %v4014_v56  ;;  %942 = vadd.xlane.f32.xlu1 %v4083_v16  ;;  %944 = vadd.xlane.f32.xlu0 %v4064_v10 }
 0x103   : > { %v811_v19 = vpop.f32.mrf.mxu0 }
 0x104   : > { %904 = vst [vmem:[%s4019_s12 + $0x70] sm:$0xff] %v4088_v18  ;;  %v4095_v20 = vadd.f32 %v4014_v56, %v811_v19 }
 0x105   : > { %v3442_v21 = vpop.f32.mrf.mxu0 }
 0x106   : > { %902 = vst [vmem:[%s4019_s12 + $0x60] sm:$0xff] %v4095_v20  ;;  %v4100_v22 = vadd.f32 %v3442_v21, %v4014_v56  ;;  %946 = vadd.xlane.f32.xlu1 %v4076_v14  ;;  %948 = vadd.xlane.f32.xlu0 %v4095_v20 }
 0x107   : > { %v814_v23 = vpop.f32.mrf.mxu0 }
 0x108   : > { %905 = vst [vmem:[%s4019_s12 + $0x78] sm:$0xff] %v4100_v22  ;;  %v4107_v24 = vadd.f32 %v4014_v56, %v814_v23 }
 0x109   : > { %v3445_v25 = vpop.f32.mrf.mxu0 }
 0x10a   : > { %903 = vst [vmem:[%s4019_s12 + $0x68] sm:$0xff] %v4107_v24  ;;  %v4112_v26 = vadd.f32 %v3445_v25, %v4014_v56  ;;  %950 = vadd.xlane.f32.xlu1 %v4107_v24  ;;  %952 = vadd.xlane.f32.xlu0 %v4088_v18 }
 0x10b   : > { %v827_v27 = vpop.f32.mrf.mxu0 }
 0x10c   : > { %908 = vst [vmem:[%s4019_s12 + $0x90] sm:$0xff] %v4112_v26  ;;  %v4119_v28 = vadd.f32 %v4014_v56, %v827_v27 }
 0x10d   : > { %v3446_v29 = vpop.f32.mrf.mxu0 }
 0x10e   : > { %906 = vst [vmem:[%s4019_s12 + $0x80] sm:$0xff] %v4119_v28  ;;  %v4124_v30 = vadd.f32 %v3446_v29, %v4014_v56  ;;  %954 = vadd.xlane.f32.xlu1 %v4100_v22  ;;  %956 = vadd.xlane.f32.xlu0 %v4119_v28 }
 0x10f   : > { %v830_v31 = vpop.f32.mrf.mxu0 }
 0x110   : > { %909 = vst [vmem:[%s4019_s12 + $0x98] sm:$0xff] %v4124_v30  ;;  %v4131_v32 = vadd.f32 %v4014_v56, %v830_v31 }
 0x111   : > { %v3449_v33 = vpop.f32.mrf.mxu0 }
 0x112   : > { %907 = vst [vmem:[%s4019_s12 + $0x88] sm:$0xff] %v4131_v32  ;;  %958 = vadd.xlane.f32.xlu1 %v4131_v32  ;;  %960 = vadd.xlane.f32.xlu0 %v4112_v26  ;;  %v4138_v34 = vadd.f32 %v3449_v33, %v4014_v56  ;;  %v3573_v33 = vld [vmem:[%s5353_s7 + $0x94] ss:$12 sps:$4 sm:$0xff]  }
 0x113   : > { %v843_v35 = vpop.f32.mrf.mxu0  ;;  %1531 = vmatprep.subr.bf16.mxu1 %v3573_v33  ;;  %v3592_v33 = vld [vmem:[%s5353_s7 + $0x1c] ss:$12 sps:$4 sm:$0xff]  }
 0x114   : > { %912 = vst [vmem:[%s4019_s12 + $0xb0] sm:$0xff] %v4138_v34  ;;  %v4143_v36 = vadd.f32 %v4014_v56, %v843_v35 }
 0x115   : > { %v3450_v37 = vpop.f32.mrf.mxu0 }
 0x116   : > { %962 = vadd.xlane.f32.xlu1 %v4124_v30  ;;  %910 = vst [vmem:[%s4019_s12 + $0xa0] sm:$0xff] %v4143_v36  ;;  %v4149_v38 = vadd.f32 %v3450_v37, %v4014_v56 }
 0x117   : > { %v846_v39 = vpop.f32.mrf.mxu0 }
 0x118   : > { %913 = vst [vmem:[%s4019_s12 + $0xb8] sm:$0xff] %v4149_v38  ;;  %v4154_v40 = vadd.f32 %v4014_v56, %v846_v39 }
 0x119   : > { %v3453_v41 = vpop.f32.mrf.mxu0 }
 0x11a   : > { %911 = vst [vmem:[%s4019_s12 + $0xa8] sm:$0xff] %v4154_v40  ;;  %v4159_v42 = vadd.f32 %v3453_v41, %v4014_v56  ;;  %v3576_v41 = vld [vmem:[%s5353_s7 + $0x7c] ss:$12 sps:$4 sm:$0xff]  }
 0x11b   : > { %v859_v43 = vpop.f32.mrf.mxu0 }
 0x11c   : > { %916 = vst [vmem:[%s4019_s12 + $0xd0] sm:$0xff] %v4159_v42  ;;  %v4164_v44 = vadd.f32 %v4014_v56, %v859_v43  ;;  %v3578_v43 = vld [vmem:[%s5353_s7 + $0xb0] ss:$12 sps:$4 sm:$0xff]  }
 0x11d   : > { %v3454_v45 = vpop.f32.mrf.mxu0  ;;  %3459 = vmatprep.subr.bf16.mxu0 %v3578_v43 }
 0x11e   : > { %914 = vst [vmem:[%s4019_s12 + $0xc0] sm:$0xff] %v4164_v44  ;;  %v4169_v46 = vadd.f32 %v3454_v45, %v4014_v56  ;;  %3460 = vmatpush3.bf16.msra.mxu0 %v3578_v43  ;;  %v3596_v43 = vld [vmem:[%s5353_s7 + $0x4] ss:$12 sps:$4 sm:$0xff]  }
 0x11f   : > { %v862_v47 = vpop.f32.mrf.mxu0  ;;  %3461 = vmatprep.subr.bf16.mxu0 %v3582_v58 }
 0x120   : > { %917 = vst [vmem:[%s4019_s12 + $0xd8] sm:$0xff] %v4169_v46  ;;  %v4174_v48 = vadd.f32 %v4014_v56, %v862_v47  ;;  %v3579_v47 = vld [vmem:[%s5353_s7 + $0x78] ss:$12 sps:$4 sm:$0xff]  }
 0x121   : > { %v3457_v49 = vpop.f32.mrf.mxu0 }
 0x122   : > { %915 = vst [vmem:[%s4019_s12 + $0xc8] sm:$0xff] %v4174_v48  ;;  %v4179_v50 = vadd.f32 %v3457_v49, %v4014_v56  ;;  %3462 = vmatpush3.bf16.msra.mxu0 %v3582_v58 }
 0x123   : > { %v875_v51 = vpop.f32.mrf.mxu0 }
 0x124   : > { %920 = vst [vmem:[%s4019_s12 + $0xf0] sm:$0xff] %v4179_v50  ;;  %v4184_v52 = vadd.f32 %v4014_v56, %v875_v51 }
 0x125   : > { %v3458_v53 = vpop.f32.mrf.mxu0 }
 0x126   : > { %918 = vst [vmem:[%s4019_s12 + $0xe0] sm:$0xff] %v4184_v52  ;;  %v4189_v54 = vadd.f32 %v3458_v53, %v4014_v56 }
 0x127   : > { %v878_v55 = vpop.f32.mrf.mxu0 }
 0x128   : > { %921 = vst [vmem:[%s4019_s12 + $0xf8] sm:$0xff] %v4189_v54  ;;  %v4194_v3 = vadd.f32 %v4014_v56, %v878_v55  ;;  %v3580_v55 = vld [vmem:[%s5353_s7 + $0x64] ss:$12 sps:$4 sm:$0xff]  }
 0x12a   : > { %919 = vst [vmem:[%s4019_s12 + $0xe8] sm:$0xff] %v4194_v3  ;;  %s3746_s12 = smov [#allocation2]  }
 0x12b   : > { %s3670_s26 = sshll.u32 %s3746_s12, 4  ;;  %s3671_s26 = int_to_ptr.vmem [resolvable:$false] %s3670_s26 }
 0x12c   : > { %s3672_s14 = scalar_lea.vmem %s3671_s26, 8192  ;;  %p3673_p1 = scmp.lt.s32.totalorder %s5177_s28, %s3671_s26 }
 0x12d   : > { %p3674_p2 = scmp.lt.s32.totalorder %s3672_s14, %s3666_s20 }
 0x12f   : > { %p3675_p3 = por %p3674_p2, %p3673_p1 }
 0x131   : > { %p3676_p5 = pnand %p3675_p3, %p3669_p0 }
 0x175   : > { %v929_v61 = vpop.xlane.xlu1 %928 }
 0x176   : > { %v991_v7 = vmul.f32 0.0078125, %v929_v61 }
 0x177   : > { %v925_v63 = vpop.xlane.xlu0 %924 }
 0x178   : > { %v989_v1 = vmul.f32 0.0078125, %v925_v63  ;;  %v4215_v21 = vsub.f32 %v4017_v57, %v991_v7  ;;  %v3586_v7 = vld [vmem:[%s5353_s7 + $0x80] ss:$12 sps:$4 sm:$0xff]  }
 0x179   : > { %v931_v13 = vpop.xlane.xlu1 %930  ;;  %3463 = vmatprep.subr.bf16.mxu0 %v3586_v7 }
 0x17a   : > { %v4205_v4 = vsub.f32 %v4024_v6, %v989_v1  ;;  %v992_v17 = vmul.f32 0.0078125, %v931_v13  ;;  %v1055_v25 = vmul.f32 %v4215_v21, %v4215_v21  ;;  %3464 = vmatpush3.bf16.msra.mxu0 %v3586_v7  ;;  %v3601_v7 = vld [vmem:[%s5353_s7 + $0x8] ss:$12 sps:$4 sm:$0xff]  }
 0x17b   : > { %v927_v56 = vpop.xlane.xlu0 %926 }
 0x17c   : > { %v990_v9 = vmul.f32 0.0078125, %v927_v56  ;;  %v1053_v11 = vmul.f32 %v4205_v4, %v4205_v4  ;;  %v4221_v27 = vsub.f32 %v4030_v60, %v992_v17  ;;  %v3575_v60 = vld [vmem:[%s5353_s7 + $0x90] ss:$12 sps:$4 sm:$0xff]   ;;  %v3584_v56 = vld [vmem:[%s5353_s7 + $0x4c] ss:$12 sps:$4 sm:$0xff]  }
 0x17d   : > { %1532 = vmatpush1.bf16.msra.mxu1 %v3575_v60  ;;  %v3595_v60 = vld [vmem:[%s5353_s7 + $0x18] ss:$12 sps:$4 sm:$0xff]  }
 0x17e   : > { %1085 = vadd.xlane.f32.xlu0 %v1053_v11  ;;  %v4210_v15 = vsub.f32 %v4036_v62, %v990_v9  ;;  %v1056_v57 = vmul.f32 %v4221_v27, %v4221_v27  ;;  %1533 = vmatprep.subr.bf16.mxu1 %v3576_v41  ;;  %v3587_v11 = vld [vmem:[%s5353_s7 + $0x48] ss:$12 sps:$4 sm:$0xff]  }
 0x17f   : > { %v933_v6 = vpop.xlane.xlu0 %932 }
 0x180   : > { %v1054_v19 = vmul.f32 %v4210_v15, %v4210_v15  ;;  %v993_v23 = vmul.f32 0.0078125, %v933_v6  ;;  %v3590_v6 = vld [vmem:[%s5353_s7 + $0x68] ss:$12 sps:$4 sm:$0xff]  }
 0x181   : > { %1534 = vmatpush1.bf16.msra.mxu1 %v3579_v47  ;;  %3465 = vmatprep.subr.bf16.mxu0 %v3590_v6 }
 0x182   : > { %964 = vadd.xlane.f32.xlu0 %v4143_v36  ;;  %1087 = vadd.xlane.f32.xlu1 %v1054_v19  ;;  %v4227_v31 = vsub.f32 %v4048_v2, %v993_v23  ;;  %v3588_v19 = vld [vmem:[%s5353_s7 + $0x34] ss:$12 sps:$4 sm:$0xff]  }
 0x183   : > { %v935_v62 = vpop.xlane.xlu1 %934  ;;  %v937_v35 = vpop.xlane.xlu0 %936  ;;  %1535 = vmatprep.subr.bf16.mxu1 %v3580_v55  ;;  %3466 = vmatpush3.bf16.msra.mxu0 %v3590_v6  ;;  %v3600_v55 = vld [vmem:[%s5353_s7 + $0x20] ss:$12 sps:$4 sm:$0xff]  }
 0x184   : > { %v994_v29 = vmul.f32 0.0078125, %v935_v62  ;;  %v995_v37 = vmul.f32 0.0078125, %v937_v35  ;;  %v1057_v39 = vmul.f32 %v4227_v31, %v4227_v31  ;;  %v3594_v35 = vld [vmem:[%s5353_s7 + $0x50] ss:$12 sps:$4 sm:$0xff]  }
 0x185   : > { %1536 = vmatpush1.bf16.msra.mxu1 %v3583_v59  ;;  %3467 = vmatprep.subr.bf16.mxu0 %v3594_v35  ;;  %v3744_v59 = vmov 0  }
 0x186   : > { %1089 = vadd.xlane.f32.xlu0 %v1055_v25  ;;  %966 = vadd.xlane.f32.xlu1 %v4154_v40  ;;  %v4239_v2 = vsub.f32 %v4059_v8, %v994_v29  ;;  %v4254_v53 = vsub.f32 %v4042_v0, %v995_v37  ;;  %v3591_v25 = vld [vmem:[%s5353_s7 + $0x30] ss:$12 sps:$4 sm:$0xff]  }
 0x187   : > { %v939_v45 = vpop.xlane.xlu1 %938  ;;  %v941_v49 = vpop.xlane.xlu0 %940  ;;  %1537 = vmatprep.subr.bf16.mxu1 %v3584_v56  ;;  %3468 = vmatpush3.bf16.msra.mxu0 %v3594_v35 }
 0x188   : > { %v996_v8 = vmul.f32 0.0078125, %v939_v45  ;;  %v1058_v51 = vmul.f32 %v4239_v2, %v4239_v2  ;;  %v997_v0 = vmul.f32 0.0078125, %v941_v49  ;;  %v1059_v63 = vmul.f32 %v4254_v53, %v4254_v53  ;;  %v3598_v45 = vld [vmem:[%s5353_s7 + $0x38] ss:$12 sps:$4 sm:$0xff]   ;;  %v3599_v49 = vld [vmem:[%s5353_s7] ss:$12 sps:$4 sm:$0xff]   ;;  %1561 = vmatprep.mubr.bf16.mxu1 %v3744_v59 }
 0x189   : > { %1538 = vmatpush1.bf16.msra.mxu1 %v3587_v11  ;;  %3469 = vmatprep.subr.bf16.mxu0 %v3598_v45 }
 0x18a   : > { %968 = vadd.xlane.f32.xlu0 %v4138_v34  ;;  %1091 = vadd.xlane.f32.xlu1 %v1056_v57  ;;  %v4269_v1 = vsub.f32 %v4053_v5, %v996_v8  ;;  %v4284_v17 = vsub.f32 %v4071_v12, %v997_v0 }
 0x18b   : > { %v943_v61 = vpop.xlane.xlu1 %942  ;;  %v945_v9 = vpop.xlane.xlu0 %944  ;;  %1539 = vmatprep.subr.bf16.mxu1 %v3588_v19  ;;  %3470 = vmatpush3.bf16.msra.mxu0 %v3598_v45 }
 0x18c   : > { %v998_v5 = vmul.f32 0.0078125, %v943_v61  ;;  %v1060_v13 = vmul.f32 %v4269_v1, %v4269_v1  ;;  %v999_v62 = vmul.f32 0.0078125, %v945_v9  ;;  %v1061_v29 = vmul.f32 %v4284_v17, %v4284_v17  ;;  %3471 = vmatprep.subr.bf16.mxu0 %v3600_v55 }
 0x18d   : > { %1540 = vmatpush1.bf16.msra.mxu1 %v3591_v25 }
 0x18e   : > { %970 = vadd.xlane.f32.xlu1 %v4149_v38  ;;  %1093 = vadd.xlane.f32.xlu0 %v1057_v39  ;;  %v4299_v57 = vsub.f32 %v4083_v16, %v998_v5  ;;  %v4314_v41 = vsub.f32 %v4064_v10, %v999_v62 }
 0x18f   : > { %v947_v23 = vpop.xlane.xlu1 %946  ;;  %v949_v12 = vpop.xlane.xlu0 %948  ;;  %1541 = vmatprep.subr.bf16.mxu1 %v3592_v33  ;;  %3472 = vmatpush3.bf16.msra.mxu0 %v3600_v55 }
 0x190   : > { %v1000_v16 = vmul.f32 0.0078125, %v947_v23  ;;  %v1062_v39 = vmul.f32 %v4299_v57, %v4299_v57  ;;  %v1001_v10 = vmul.f32 0.0078125, %v949_v12  ;;  %v1063_v8 = vmul.f32 %v4314_v41, %v4314_v41  ;;  %3473 = vmatprep.subr.bf16.mxu0 %v3601_v7 }
 0x191   : > { %1542 = vmatpush1.bf16.msra.mxu1 %v3595_v60 }
 0x192   : > { %1095 = vadd.xlane.f32.xlu1 %v1058_v51  ;;  %972 = vadd.xlane.f32.xlu0 %v4164_v44  ;;  %v4329_v51 = vsub.f32 %v4076_v14, %v1000_v16  ;;  %v4339_v56 = vsub.f32 %v4095_v20, %v1001_v10 }
 0x193   : > { %v951_v37 = vpop.xlane.xlu1 %950  ;;  %v953_v47 = vpop.xlane.xlu0 %952  ;;  %1543 = vmatprep.subr.bf16.mxu1 %v3596_v43  ;;  %3474 = vmatpush3.bf16.msra.mxu0 %v3601_v7 }
 0x194   : > { %v1002_v61 = vmul.f32 0.0078125, %v951_v37  ;;  %v1064_v14 = vmul.f32 %v4329_v51, %v4329_v51  ;;  %v1065_v19 = vmul.f32 %v4339_v56, %v4339_v56 }
 0x195   : > { %1544 = vmatpush1.bf16.msra.mxu1 %v3599_v49 }
 0x196   : > { %974 = vadd.xlane.f32.xlu1 %v4174_v48  ;;  %1097 = vadd.xlane.f32.xlu0 %v1059_v63  ;;  %v1003_v63 = vmul.f32 0.0078125, %v953_v47  ;;  %v4346_v5 = vsub.f32 %v4107_v24, %v1002_v61 }
 0x197   : > { %v955_v58 = vpop.xlane.xlu1 %954  ;;  %v957_v0 = vpop.xlane.xlu0 %956 }
 0x198   : > { %v1004_v9 = vmul.f32 0.0078125, %v955_v58  ;;  %v4351_v20 = vsub.f32 %v4088_v18, %v1003_v63  ;;  %v1066_v23 = vmul.f32 %v4346_v5, %v4346_v5 }
 0x19a   : > { %1099 = vadd.xlane.f32.xlu1 %v1060_v13  ;;  %976 = vadd.xlane.f32.xlu0 %v4159_v42  ;;  %v1005_v13 = vmul.f32 0.0078125, %v957_v0  ;;  %v4357_v25 = vsub.f32 %v4100_v22, %v1004_v9  ;;  %v1067_v62 = vmul.f32 %v4351_v20, %v4351_v20 }
 0x19b   : > { %v959_v11 = vpop.xlane.xlu1 %958  ;;  %v961_v6 = vpop.xlane.xlu0 %960 }
 0x19c   : > { %v1006_v24 = vmul.f32 0.0078125, %v959_v11  ;;  %v1007_v12 = vmul.f32 0.0078125, %v961_v6  ;;  %v1068_v33 = vmul.f32 %v4357_v25, %v4357_v25 }
 0x19e   : > { %978 = vadd.xlane.f32.xlu1 %v4169_v46  ;;  %1101 = vadd.xlane.f32.xlu0 %v1061_v29  ;;  %v4362_v29 = vsub.f32 %v4119_v28, %v1005_v13  ;;  %v4369_v22 = vsub.f32 %v4131_v32, %v1006_v24  ;;  %v4372_v37 = vsub.f32 %v4112_v26, %v1007_v12 }
 0x19f   : > { %v963_v18 = vpop.xlane.xlu1 %962 }
 0x1a0   : > { %v1008_v35 = vmul.f32 0.0078125, %v963_v18  ;;  %v1069_v60 = vmul.f32 %v4362_v29, %v4362_v29  ;;  %v1070_v28 = vmul.f32 %v4369_v22, %v4369_v22  ;;  %v1071_v16 = vmul.f32 %v4372_v37, %v4372_v37 }
 0x1a2   : > { %1103 = vadd.xlane.f32.xlu1 %v1062_v39  ;;  %980 = vadd.xlane.f32.xlu0 %v4184_v52  ;;  %v4379_v39 = vsub.f32 %v4124_v30, %v1008_v35 }
 0x1a4   : > { %v1072_v32 = vmul.f32 %v4379_v39, %v4379_v39 }
 0x1a6   : > { %982 = vadd.xlane.f32.xlu1 %v4194_v3  ;;  %1105 = vadd.xlane.f32.xlu0 %v1063_v8 }
 0x1aa   : > { %1107 = vadd.xlane.f32.xlu1 %v1064_v14  ;;  %984 = vadd.xlane.f32.xlu0 %v4179_v50 }
 0x1ae   : > { %986 = vadd.xlane.f32.xlu1 %v4189_v54  ;;  %1109 = vadd.xlane.f32.xlu0 %v1065_v19 }
 0x1b2   : > { %1111 = vadd.xlane.f32.xlu1 %v1066_v23  ;;  %1113 = vadd.xlane.f32.xlu0 %v1067_v62 }
 0x1b6   : > { %1115 = vadd.xlane.f32.xlu1 %v1068_v33  ;;  %1117 = vadd.xlane.f32.xlu0 %v1069_v60 }
 0x1ba   : > { %1119 = vadd.xlane.f32.xlu1 %v1070_v28  ;;  %1121 = vadd.xlane.f32.xlu0 %v1071_v16 }
 0x1be   : > { %1123 = vadd.xlane.f32.xlu1 %v1072_v32 }
 0x207   : > { %v1086_v43 = vpop.xlane.xlu0 %1085 }
 0x208   : > { %v1149_v26 = vmul.f32 0.0078125, %v1086_v43 }
 0x20a   : > { %v1181_v45 = vadd.f32 1e-05, %v1149_v26 }
 0x20b   : > { %v1088_v47 = vpop.xlane.xlu1 %1087  ;;  %v965_v49 = vpop.xlane.xlu0 %964 }
 0x20c   : > { %3602 = vrsqrt.f32 %v1181_v45  ;;  %v1150_v10 = vmul.f32 0.0078125, %v1088_v47  ;;  %v1009_v8 = vmul.f32 0.0078125, %v965_v49  ;;  %v4407_v47 = vld [vmem:[%s5351_s5] ss:$0 sm:$0xff] }
 0x20e   : > { %v1182_v55 = vadd.f32 1e-05, %v1150_v10  ;;  %v4384_v58 = vsub.f32 %v4143_v36, %v1009_v8 }
 0x20f   : > { %v967_v30 = vpop.xlane.xlu1 %966  ;;  %v1090_v61 = vpop.xlane.xlu0 %1089 }
 0x210   : > { %3604 = vrsqrt.f32 %v1182_v55  ;;  %v1010_v0 = vmul.f32 0.0078125, %v967_v30  ;;  %v1151_v63 = vmul.f32 0.0078125, %v1090_v61  ;;  %v1073_v14 = vmul.f32 %v4384_v58, %v4384_v58 }
 0x212   : > { %v1183_v7 = vadd.f32 1e-05, %v1151_v63  ;;  %1125 = vadd.xlane.f32.xlu0 %v1073_v14  ;;  %v4389_v9 = vsub.f32 %v4154_v40, %v1010_v0  ;;  %v4419_v14 = vld [vmem:[%s5352_s6] ss:$0 sm:$0xff] }
 0x213   : > { %v1092_v11 = vpop.xlane.xlu1 %1091  ;;  %v969_v13 = vpop.xlane.xlu0 %968 }
 0x214   : > { %3606 = vrsqrt.f32 %v1183_v7  ;;  %v1152_v19 = vmul.f32 0.0078125, %v1092_v11  ;;  %v1011_v6 = vmul.f32 0.0078125, %v969_v13  ;;  %v1074_v36 = vmul.f32 %v4389_v9, %v4389_v9 }
 0x216   : > { %v1184_v23 = vadd.f32 1e-05, %v1152_v19  ;;  %1127 = vadd.xlane.f32.xlu1 %v1074_v36  ;;  %v4394_v24 = vsub.f32 %v4138_v34, %v1011_v6 }
 0x217   : > { %v971_v12 = vpop.xlane.xlu1 %970  ;;  %v1094_v62 = vpop.xlane.xlu0 %1093 }
 0x218   : > { %3608 = vrsqrt.f32 %v1184_v23  ;;  %v1012_v18 = vmul.f32 0.0078125, %v971_v12  ;;  %v1153_v33 = vmul.f32 0.0078125, %v1094_v62  ;;  %v1075_v40 = vmul.f32 %v4394_v24, %v4394_v24 }
 0x219   : > { %v3603_v35 = vpop.eup %3602 }
 0x21a   : > { %v1185_v60 = vadd.f32 1e-05, %v1153_v33  ;;  %1129 = vadd.xlane.f32.xlu0 %v1075_v40  ;;  %v4399_v28 = vsub.f32 %v4149_v38, %v1012_v18  ;;  %v1245_v43 = vmul.f32 %v3603_v35, %v4205_v4 }
 0x21b   : > { %v1096_v16 = vpop.xlane.xlu1 %1095  ;;  %v973_v32 = vpop.xlane.xlu0 %972 }
 0x21c   : > { %3610 = vrsqrt.f32 %v1185_v60  ;;  %v1154_v34 = vmul.f32 0.0078125, %v1096_v16  ;;  %v1013_v26 = vmul.f32 0.0078125, %v973_v32  ;;  %v1076_v45 = vmul.f32 %v4399_v28, %v4399_v28 }
 0x21d   : > { %v3605_v49 = vpop.eup %3604  ;;  %v1283_v30 = vmul.f32 %v4407_v47, %v1245_v43 }
 0x21e   : > { %v1186_v10 = vadd.f32 1e-05, %v1154_v34  ;;  %1131 = vadd.xlane.f32.xlu1 %v1076_v45  ;;  %v4410_v38 = vsub.f32 %v4164_v44, %v1013_v26  ;;  %v1246_v8 = vmul.f32 %v3605_v49, %v4210_v15 }
 0x21f   : > { %v975_v4 = vpop.xlane.xlu1 %974  ;;  %v1098_v55 = vpop.xlane.xlu0 %1097  ;;  %v1321_v6 = vadd.f32 %v4419_v14, %v1283_v30 }
 0x220   : > { %3612 = vrsqrt.f32 %v1186_v10  ;;  %v1014_v61 = vmul.f32 0.0078125, %v975_v4  ;;  %v1155_v0 = vmul.f32 0.0078125, %v1098_v55  ;;  %v1077_v63 = vmul.f32 %v4410_v38, %v4410_v38 }
 0x221   : > { %v3607_v7 = vpop.eup %3606  ;;  %v1284_v44 = vmul.f32 %v4407_v47, %v1246_v8 }
 0x222   : > { %v1187_v11 = vadd.f32 1e-05, %v1155_v0  ;;  %1133 = vadd.xlane.f32.xlu0 %v1077_v63  ;;  %v4423_v15 = vsub.f32 %v4174_v48, %v1014_v61  ;;  %v1247_v23 = vmul.f32 %v3607_v7, %v4215_v21 }
 0x223   : > { %v1100_v13 = vpop.xlane.xlu1 %1099  ;;  %v977_v19 = vpop.xlane.xlu0 %976  ;;  %v1322_v36 = vadd.f32 %v4419_v14, %v1284_v44 }
 0x224   : > { %3614 = vrsqrt.f32 %v1187_v11  ;;  %v1156_v12 = vmul.f32 0.0078125, %v1100_v13  ;;  %v1015_v62 = vmul.f32 0.0078125, %v977_v19  ;;  %v1078_v18 = vmul.f32 %v4423_v15, %v4423_v15 }
 0x225   : > { %v3609_v33 = vpop.eup %3608  ;;  %v1353_v40 = vpack.c.bf16 %v1322_v36, %v1321_v6  ;;  %v1285_v21 = vmul.f32 %v4407_v47, %v1247_v23 }
 0x226   : > { %v1188_v35 = vadd.f32 1e-05, %v1156_v12  ;;  %1135 = vadd.xlane.f32.xlu1 %v1078_v18  ;;  %v4431_v48 = vsub.f32 %v4159_v42, %v1015_v62  ;;  %v1248_v60 = vmul.f32 %v3609_v33, %v4221_v27 }
 0x227   : > { %1562 = vmatmul.mubr.bf16.vlgmr.msra.gmra.mxu1 %v1353_v40  ;;  %3475 = vmatprep.mubr.bf16.mxu0 %v1353_v40  ;;  %v979_v16 = vpop.xlane.xlu1 %978  ;;  %v1102_v32 = vpop.xlane.xlu0 %1101  ;;  %v1323_v4 = vadd.f32 %v4419_v14, %v1285_v21 }
 0x228   : > { %3616 = vrsqrt.f32 %v1188_v35  ;;  %v1016_v43 = vmul.f32 0.0078125, %v979_v16  ;;  %v1157_v34 = vmul.f32 0.0078125, %v1102_v32  ;;  %v1079_v26 = vmul.f32 %v4431_v48, %v4431_v48  ;;  %1571 = vmatprep.mubr.bf16.mxu1 %v3744_v59 }
 0x229   : > { %v3611_v45 = vpop.eup %3610  ;;  %v1286_v42 = vmul.f32 %v4407_v47, %v1248_v60 }
 0x22a   : > { %v1189_v49 = vadd.f32 1e-05, %v1157_v34  ;;  %1137 = vadd.xlane.f32.xlu0 %v1079_v26  ;;  %v4440_v27 = vsub.f32 %v4169_v46, %v1016_v43  ;;  %v1249_v30 = vmul.f32 %v3611_v45, %v4227_v31 }
 0x22b   : > { %v1104_v10 = vpop.xlane.xlu1 %1103  ;;  %v981_v8 = vpop.xlane.xlu0 %980  ;;  %v1324_v55 = vadd.f32 %v4419_v14, %v1286_v42 }
 0x22c   : > { %3618 = vrsqrt.f32 %v1189_v49  ;;  %v1158_v61 = vmul.f32 0.0078125, %v1104_v10  ;;  %v1017_v0 = vmul.f32 0.0078125, %v981_v8  ;;  %v1080_v63 = vmul.f32 %v4440_v27, %v4440_v27 }
 0x22d   : > { %v3613_v7 = vpop.eup %3612  ;;  %v1354_v44 = vpack.c.bf16 %v1324_v55, %v1323_v4  ;;  %v1287_v31 = vmul.f32 %v4407_v47, %v1249_v30 }
 0x22e   : > { %v1190_v11 = vadd.f32 1e-05, %v1158_v61  ;;  %1139 = vadd.xlane.f32.xlu1 %v1080_v63  ;;  %v4448_v46 = vsub.f32 %v4184_v52, %v1017_v0  ;;  %v1250_v13 = vmul.f32 %v3613_v7, %v4239_v2 }
 0x22f   : > { %1572 = vmatmul.mubr.bf16.gmra.mxu1 %v1354_v44  ;;  %3476 = vmatmul.mubr.bf16.vlgmr.msra.gmra.mxu0 %v1354_v44  ;;  %v983_v19 = vpop.xlane.xlu1 %982  ;;  %v1106_v6 = vpop.xlane.xlu0 %1105  ;;  %v1325_v35 = vadd.f32 %v4419_v14, %v1287_v31 }
 0x230   : > { %3620 = vrsqrt.f32 %v1190_v11  ;;  %v1018_v36 = vmul.f32 0.0078125, %v983_v19  ;;  %v1159_v23 = vmul.f32 0.0078125, %v1106_v6  ;;  %v1081_v12 = vmul.f32 %v4448_v46, %v4448_v46  ;;  %1581 = vmatprep.mubr.bf16.mxu1 %v3744_v59 }
 0x231   : > { %v3615_v62 = vpop.eup %3614  ;;  %v1288_v52 = vmul.f32 %v4407_v47, %v1250_v13 }
 0x232   : > { %v1191_v18 = vadd.f32 1e-05, %v1159_v23  ;;  %1141 = vadd.xlane.f32.xlu0 %v1081_v12  ;;  %v4457_v2 = vsub.f32 %v4194_v3, %v1018_v36  ;;  %v1251_v16 = vmul.f32 %v3615_v62, %v4254_v53 }
 0x233   : > { %v1108_v33 = vpop.xlane.xlu1 %1107  ;;  %v985_v40 = vpop.xlane.xlu0 %984  ;;  %v1326_v60 = vadd.f32 %v4419_v14, %v1288_v52 }
 0x234   : > { %3622 = vrsqrt.f32 %v1191_v18  ;;  %v1160_v32 = vmul.f32 0.0078125, %v1108_v33  ;;  %v1019_v21 = vmul.f32 0.0078125, %v985_v40  ;;  %v1082_v43 = vmul.f32 %v4457_v2, %v4457_v2 }
 0x235   : > { %v3617_v34 = vpop.eup %3616  ;;  %v1355_v26 = vpack.c.bf16 %v1326_v60, %v1325_v35  ;;  %v1289_v53 = vmul.f32 %v4407_v47, %v1251_v16 }
 0x236   : > { %v1192_v45 = vadd.f32 1e-05, %v1160_v32  ;;  %1143 = vadd.xlane.f32.xlu1 %v1082_v43  ;;  %v4465_v3 = vsub.f32 %v4179_v50, %v1019_v21  ;;  %v1252_v42 = vmul.f32 %v3617_v34, %v4269_v1 }
 0x237   : > { %1582 = vmatmul.mubr.bf16.gmra.mxu1 %v1355_v26  ;;  %3479 = vmatprep.mubr.bf16.mxu0 %v1355_v26  ;;  %v987_v49 = vpop.xlane.xlu1 %986  ;;  %v1110_v10 = vpop.xlane.xlu0 %1109  ;;  %v1327_v44 = vadd.f32 %v4419_v14, %v1289_v53 }
 0x238   : > { %3624 = vrsqrt.f32 %v1192_v45  ;;  %v1020_v8 = vmul.f32 0.0078125, %v987_v49  ;;  %v1161_v4 = vmul.f32 0.0078125, %v1110_v10  ;;  %v1083_v55 = vmul.f32 %v4465_v3, %v4465_v3  ;;  %1591 = vmatprep.mubr.bf16.mxu1 %v3744_v59 }
 0x239   : > { %v3619_v30 = vpop.eup %3618  ;;  %v1290_v50 = vmul.f32 %v4407_v47, %v1252_v42 }
 0x23a   : > { %v1193_v61 = vadd.f32 1e-05, %v1161_v4  ;;  %1145 = vadd.xlane.f32.xlu0 %v1083_v55  ;;  %v4474_v1 = vsub.f32 %v4189_v54, %v1020_v8  ;;  %v1253_v0 = vmul.f32 %v3619_v30, %v4284_v17 }
 0x23b   : > { %v1112_v63 = vpop.xlane.xlu1 %1111  ;;  %v1114_v7 = vpop.xlane.xlu0 %1113  ;;  %v1328_v11 = vadd.f32 %v4419_v14, %v1290_v50 }
 0x23c   : > { %3626 = vrsqrt.f32 %v1193_v61  ;;  %v1162_v13 = vmul.f32 0.0078125, %v1112_v63  ;;  %v1163_v19 = vmul.f32 0.0078125, %v1114_v7  ;;  %v1084_v6 = vmul.f32 %v4474_v1, %v4474_v1 }
 0x23d   : > { %v3621_v31 = vpop.eup %3620  ;;  %v1356_v36 = vpack.c.bf16 %v1328_v11, %v1327_v44  ;;  %v1291_v23 = vmul.f32 %v4407_v47, %v1253_v0 }
 0x23e   : > { %v1194_v54 = vadd.f32 1e-05, %v1162_v13  ;;  %v1195_v12 = vadd.f32 1e-05, %v1163_v19  ;;  %1147 = vadd.xlane.f32.xlu1 %v1084_v6  ;;  %v1254_v17 = vmul.f32 %v3621_v31, %v4299_v57 }
 0x23f   : > { %1592 = vmatmul.mubr.bf16.gmra.mxu1 %v1356_v36  ;;  %3480 = vmatmul.mubr.bf16.gmra.mxu0 %v1356_v36  ;;  %v1116_v62 = vpop.xlane.xlu1 %1115  ;;  %v1118_v52 = vpop.xlane.xlu0 %1117  ;;  %v1329_v60 = vadd.f32 %v4419_v14, %v1291_v23 }
 0x240   : > { %3628 = vrsqrt.f32 %v1194_v54  ;;  %v1164_v18 = vmul.f32 0.0078125, %v1116_v62  ;;  %v1165_v33 = vmul.f32 0.0078125, %v1118_v52  ;;  %1601 = vmatprep.mubr.bf16.mxu1 %v3744_v59  ;;  %v1292_v40 = vmul.f32 %v4407_v47, %v1254_v17 }
 0x241   : > { %v3623_v35 = vpop.eup %3622  ;;  %3630 = vrsqrt.f32 %v1195_v12 }
 0x242   : > { %v1196_v16 = vadd.f32 1e-05, %v1164_v18  ;;  %v1197_v32 = vadd.f32 1e-05, %v1165_v33  ;;  %v1330_v21 = vadd.f32 %v4419_v14, %v1292_v40  ;;  %v1255_v57 = vmul.f32 %v3623_v35, %v4314_v41 }
 0x243   : > { %v1120_v43 = vpop.xlane.xlu1 %1119  ;;  %v1122_v34 = vpop.xlane.xlu0 %1121 }
 0x244   : > { %3632 = vrsqrt.f32 %v1196_v16  ;;  %v1166_v26 = vmul.f32 0.0078125, %v1120_v43  ;;  %v1167_v45 = vmul.f32 0.0078125, %v1122_v34  ;;  %v1357_v42 = vpack.c.bf16 %v1330_v21, %v1329_v60 }
 0x245   : > { %v3625_v49 = vpop.eup %3624  ;;  %3634 = vrsqrt.f32 %v1197_v32  ;;  %v1293_v4 = vmul.f32 %v4407_v47, %v1255_v57 }
 0x246   : > { %v1198_v10 = vadd.f32 1e-05, %v1166_v26  ;;  %v1199_v53 = vadd.f32 1e-05, %v1167_v45  ;;  %3483 = vmatprep.mubr.bf16.mxu0 %v1357_v42  ;;  %v1256_v8 = vmul.f32 %v3625_v49, %v4329_v51 }
 0x247   : > { %1602 = vmatmul.mubr.bf16.gmra.mxu1 %v1357_v42  ;;  %v1124_v55 = vpop.xlane.xlu1 %1123  ;;  %v1331_v0 = vadd.f32 %v4419_v14, %v1293_v4 }
 0x248   : > { %3636 = vrsqrt.f32 %v1198_v10  ;;  %v1168_v30 = vmul.f32 0.0078125, %v1124_v55  ;;  %1611 = vmatprep.mubr.bf16.mxu1 %v3744_v59  ;;  %v1294_v41 = vmul.f32 %v4407_v47, %v1256_v8 }
 0x249   : > { %v3627_v50 = vpop.eup %3626  ;;  %3638 = vrsqrt.f32 %v1199_v53 }
 0x24a   : > { %v1200_v61 = vadd.f32 1e-05, %v1168_v30  ;;  %v1332_v63 = vadd.f32 %v4419_v14, %v1294_v41  ;;  %v1257_v7 = vmul.f32 %v3627_v50, %v4339_v56 }
 0x24c   : > { %3640 = vrsqrt.f32 %v1200_v61  ;;  %v1358_v51 = vpack.c.bf16 %v1332_v63, %v1331_v0  ;;  %v1295_v19 = vmul.f32 %v4407_v47, %v1257_v7 }
 0x24d   : > { %v3629_v44 = vpop.eup %3628 }
 0x24e   : > { %v3631_v11 = vpop.eup %3630  ;;  %3484 = vmatmul.mubr.bf16.gmra.mxu0 %v1358_v51  ;;  %v1258_v13 = vmul.f32 %v3629_v44, %v4346_v5  ;;  %v1333_v56 = vadd.f32 %v4419_v14, %v1295_v19 }
 0x24f   : > { %1612 = vmatmul.mubr.bf16.gmra.mxu1 %v1358_v51  ;;  %v1259_v6 = vmul.f32 %v3631_v11, %v4351_v20 }
 0x250   : > { %1621 = vmatprep.mubr.bf16.mxu1 %v3744_v59  ;;  %v1296_v31 = vmul.f32 %v4407_v47, %v1258_v13 }
 0x251   : > { %v3633_v36 = vpop.eup %3632  ;;  %v1297_v17 = vmul.f32 %v4407_v47, %v1259_v6 }
 0x252   : > { %v3635_v23 = vpop.eup %3634  ;;  %v1334_v54 = vadd.f32 %v4419_v14, %v1296_v31  ;;  %v1260_v12 = vmul.f32 %v3633_v36, %v4357_v25 }
 0x253   : > { %v1261_v5 = vmul.f32 %v3635_v23, %v4362_v29  ;;  %v1335_v33 = vadd.f32 %v4419_v14, %v1297_v17 }
 0x254   : > { %v1359_v62 = vpack.c.bf16 %v1334_v54, %v1333_v56  ;;  %v1298_v52 = vmul.f32 %v4407_v47, %v1260_v12 }
 0x255   : > { %v3637_v20 = vpop.eup %3636  ;;  %v1299_v60 = vmul.f32 %v4407_v47, %v1261_v5 }
 0x256   : > { %v3639_v18 = vpop.eup %3638  ;;  %3487 = vmatprep.mubr.bf16.mxu0 %v1359_v62  ;;  %v1336_v40 = vadd.f32 %v4419_v14, %v1298_v52  ;;  %v1262_v35 = vmul.f32 %v3637_v20, %v4369_v22 }
 0x257   : > { %1622 = vmatmul.mubr.bf16.gmra.mxu1 %v1359_v62  ;;  %v1263_v25 = vmul.f32 %v3639_v18, %v4372_v37  ;;  %v1337_v21 = vadd.f32 %v4419_v14, %v1299_v60 }
 0x258   : > { %v1360_v16 = vpack.c.bf16 %v1336_v40, %v1335_v33  ;;  %1631 = vmatprep.mubr.bf16.mxu1 %v3744_v59  ;;  %v1300_v29 = vmul.f32 %v4407_v47, %v1262_v35 }
 0x259   : > { %v3641_v32 = vpop.eup %3640  ;;  %v1301_v22 = vmul.f32 %v4407_v47, %v1263_v25 }
 0x25a   : > { %3488 = vmatmul.mubr.bf16.gmra.mxu0 %v1360_v16  ;;  %v1338_v57 = vadd.f32 %v4419_v14, %v1300_v29  ;;  %v1264_v43 = vmul.f32 %v3641_v32, %v4379_v39 }
 0x25b   : > { %v1339_v37 = vadd.f32 %v4419_v14, %v1301_v22 }
 0x25c   : > { %v1361_v34 = vpack.c.bf16 %v1338_v57, %v1337_v21  ;;  %v1302_v26 = vmul.f32 %v4407_v47, %v1264_v43 }
 0x25e   : > { %3491 = vmatprep.mubr.bf16.mxu0 %v1361_v34  ;;  %v1340_v45 = vadd.f32 %v4419_v14, %v1302_v26 }
 0x25f   : > { %1632 = vmatmul.mubr.bf16.gmra.mxu1 %v1360_v16 }
 0x260   : > { %v1362_v42 = vpack.c.bf16 %v1340_v45, %v1339_v37  ;;  %1641 = vmatprep.mubr.bf16.mxu1 %v3744_v59 }
 0x262   : > { %3492 = vmatmul.mubr.bf16.gmra.mxu0 %v1362_v42 }
 0x267   : > { %1642 = vmatmul.mubr.bf16.gmra.mxu1 %v1361_v34 }
 0x268   : > { %1651 = vmatprep.mubr.bf16.mxu1 %v3744_v59 }
 0x26f   : > { %1652 = vmatmul.mubr.bf16.gmra.mxu1 %v1362_v42 }
 0x270   : > { %1661 = vmatprep.mubr.bf16.mxu1 %v3744_v59 }
 0x29b   : > { %v1126_v39 = vpop.xlane.xlu0 %1125 }
 0x29c   : > { %v1169_v49 = vmul.f32 0.0078125, %v1126_v39 }
 0x29e   : > { %v1201_v10 = vadd.f32 1e-05, %v1169_v49 }
 0x29f   : > { %v1128_v53 = vpop.xlane.xlu1 %1127 }
 0x2a0   : > { %3642 = vrsqrt.f32 %v1201_v10  ;;  %v1170_v8 = vmul.f32 0.0078125, %v1128_v53 }
 0x2a2   : > { %v1202_v4 = vadd.f32 1e-05, %v1170_v8 }
 0x2a3   : > { %v1130_v55 = vpop.xlane.xlu0 %1129 }
 0x2a4   : > { %3644 = vrsqrt.f32 %v1202_v4  ;;  %v1171_v30 = vmul.f32 0.0078125, %v1130_v55 }
 0x2a6   : > { %v1203_v41 = vadd.f32 1e-05, %v1171_v30 }
 0x2a7   : > { %v1132_v50 = vpop.xlane.xlu1 %1131 }
 0x2a8   : > { %3646 = vrsqrt.f32 %v1203_v41  ;;  %v1172_v61 = vmul.f32 0.0078125, %v1132_v50 }
 0x2aa   : > { %v1204_v0 = vadd.f32 1e-05, %v1172_v61 }
 0x2ab   : > { %v1134_v63 = vpop.xlane.xlu0 %1133 }
 0x2ac   : > { %3648 = vrsqrt.f32 %v1204_v0  ;;  %v1173_v7 = vmul.f32 0.0078125, %v1134_v63 }
 0x2ad   : > { %v3643_v51 = vpop.eup %3642 }
 0x2ae   : > { %v1205_v44 = vadd.f32 1e-05, %v1173_v7  ;;  %v1265_v11 = vmul.f32 %v3643_v51, %v4384_v58 }
 0x2af   : > { %v1136_v13 = vpop.xlane.xlu1 %1135 }
 0x2b0   : > { %3650 = vrsqrt.f32 %v1205_v44  ;;  %v1174_v19 = vmul.f32 0.0078125, %v1136_v13  ;;  %v1303_v23 = vmul.f32 %v4407_v47, %v1265_v11 }
 0x2b1   : > { %v3645_v6 = vpop.eup %3644 }
 0x2b2   : > { %v1206_v31 = vadd.f32 1e-05, %v1174_v19  ;;  %v1266_v36 = vmul.f32 %v3645_v6, %v4389_v9  ;;  %v1341_v62 = vadd.f32 %v4419_v14, %v1303_v23 }
 0x2b3   : > { %v1138_v56 = vpop.xlane.xlu0 %1137 }
 0x2b4   : > { %3652 = vrsqrt.f32 %v1206_v31  ;;  %v1175_v54 = vmul.f32 0.0078125, %v1138_v56  ;;  %v1304_v12 = vmul.f32 %v4407_v47, %v1266_v36 }
 0x2b5   : > { %v3647_v17 = vpop.eup %3646 }
 0x2b6   : > { %v1207_v5 = vadd.f32 1e-05, %v1175_v54  ;;  %v1342_v58 = vadd.f32 %v4419_v14, %v1304_v12  ;;  %v1267_v52 = vmul.f32 %v3647_v17, %v4394_v24 }
 0x2b7   : > { %v1140_v20 = vpop.xlane.xlu1 %1139 }
 0x2b8   : > { %3654 = vrsqrt.f32 %v1207_v5  ;;  %v1176_v18 = vmul.f32 0.0078125, %v1140_v20  ;;  %v1363_v33 = vpack.c.bf16 %v1342_v58, %v1341_v62  ;;  %v1305_v60 = vmul.f32 %v4407_v47, %v1267_v52 }
 0x2b9   : > { %v3649_v9 = vpop.eup %3648 }
 0x2ba   : > { %v1208_v40 = vadd.f32 1e-05, %v1176_v18  ;;  %1662 = vmatmul.mubr.bf16.gmra.mxu1 %v1363_v33  ;;  %3495 = vmatprep.mubr.bf16.mxu0 %v1363_v33  ;;  %v1268_v35 = vmul.f32 %v3649_v9, %v4399_v28  ;;  %v1343_v21 = vadd.f32 %v4419_v14, %v1305_v60 }
 0x2bb   : > { %v1142_v25 = vpop.xlane.xlu0 %1141  ;;  %1671 = vmatprep.mubr.bf16.mxu1 %v3744_v59 }
 0x2bc   : > { %3656 = vrsqrt.f32 %v1208_v40  ;;  %v1177_v16 = vmul.f32 0.0078125, %v1142_v25  ;;  %v1306_v29 = vmul.f32 %v4407_v47, %v1268_v35 }
 0x2bd   : > { %v3651_v24 = vpop.eup %3650 }
 0x2be   : > { %v1209_v32 = vadd.f32 1e-05, %v1177_v16  ;;  %v1344_v57 = vadd.f32 %v4419_v14, %v1306_v29  ;;  %v1269_v43 = vmul.f32 %v3651_v24, %v4410_v38 }
 0x2bf   : > { %v1144_v22 = vpop.xlane.xlu1 %1143 }
 0x2c0   : > { %3658 = vrsqrt.f32 %v1209_v32  ;;  %v1178_v28 = vmul.f32 0.0078125, %v1144_v22  ;;  %v1364_v34 = vpack.c.bf16 %v1344_v57, %v1343_v21  ;;  %v1307_v42 = vmul.f32 %v4407_v47, %v1269_v43 }
 0x2c1   : > { %v3653_v26 = vpop.eup %3652 }
 0x2c2   : > { %v1210_v37 = vadd.f32 1e-05, %v1178_v28  ;;  %1672 = vmatmul.mubr.bf16.gmra.mxu1 %v1364_v34  ;;  %3496 = vmatmul.mubr.bf16.gmra.mxu0 %v1364_v34  ;;  %v1270_v45 = vmul.f32 %v3653_v26, %v4423_v15  ;;  %v1345_v8 = vadd.f32 %v4419_v14, %v1307_v42 }
 0x2c3   : > { %v1146_v39 = vpop.xlane.xlu0 %1145  ;;  %1681 = vmatprep.mubr.bf16.mxu1 %v3744_v59 }
 0x2c4   : > { %3660 = vrsqrt.f32 %v1210_v37  ;;  %v1179_v49 = vmul.f32 0.0078125, %v1146_v39  ;;  %v1308_v10 = vmul.f32 %v4407_v47, %v1270_v45 }
 0x2c5   : > { %v3655_v38 = vpop.eup %3654 }
 0x2c6   : > { %v1211_v53 = vadd.f32 1e-05, %v1179_v49  ;;  %v1346_v4 = vadd.f32 %v4419_v14, %v1308_v10  ;;  %v1271_v55 = vmul.f32 %v3655_v38, %v4431_v48 }
 0x2c7   : > { %v1148_v30 = vpop.xlane.xlu1 %1147 }
 0x2c8   : > { %3662 = vrsqrt.f32 %v1211_v53  ;;  %v1180_v15 = vmul.f32 0.0078125, %v1148_v30  ;;  %v1365_v41 = vpack.c.bf16 %v1346_v4, %v1345_v8  ;;  %v1309_v63 = vmul.f32 %v4407_v47, %v1271_v55 }
 0x2c9   : > { %v3657_v50 = vpop.eup %3656 }
 0x2ca   : > { %v1212_v61 = vadd.f32 1e-05, %v1180_v15  ;;  %1682 = vmatmul.mubr.bf16.gmra.mxu1 %v1365_v41  ;;  %3499 = vmatprep.mubr.bf16.mxu0 %v1365_v41  ;;  %v1272_v0 = vmul.f32 %v3657_v50, %v4440_v27  ;;  %v1347_v48 = vadd.f32 %v4419_v14, %v1309_v63 }
 0x2cb   : > { %1691 = vmatprep.mubr.bf16.mxu1 %v3744_v59 }
 0x2cc   : > { %3664 = vrsqrt.f32 %v1212_v61  ;;  %v1310_v7 = vmul.f32 %v4407_v47, %v1272_v0 }
 0x2cd   : > { %v3659_v51 = vpop.eup %3658 }
 0x2ce   : > { %v1348_v44 = vadd.f32 %v4419_v14, %v1310_v7  ;;  %v1273_v11 = vmul.f32 %v3659_v51, %v4448_v46 }
 0x2d0   : > { %v1366_v13 = vpack.c.bf16 %v1348_v44, %v1347_v48  ;;  %v1311_v6 = vmul.f32 %v4407_v47, %v1273_v11 }
 0x2d1   : > { %v3661_v19 = vpop.eup %3660 }
 0x2d2   : > { %1692 = vmatmul.mubr.bf16.gmra.mxu1 %v1366_v13  ;;  %3500 = vmatmul.mubr.bf16.gmra.mxu0 %v1366_v13  ;;  %v1274_v27 = vmul.f32 %v3661_v19, %v4457_v2  ;;  %v1349_v23 = vadd.f32 %v4419_v14, %v1311_v6 }
 0x2d3   : > { %1701 = vmatprep.mubr.bf16.mxu1 %v3744_v59 }
 0x2d4   : > { %v1312_v31 = vmul.f32 %v4407_v47, %v1274_v27 }
 0x2d5   : > { %v3663_v36 = vpop.eup %3662 }
 0x2d6   : > { %v1350_v56 = vadd.f32 %v4419_v14, %v1312_v31  ;;  %v1275_v46 = vmul.f32 %v3663_v36, %v4465_v3 }
 0x2d8   : > { %v1367_v54 = vpack.c.bf16 %v1350_v56, %v1349_v23  ;;  %v1313_v17 = vmul.f32 %v4407_v47, %v1275_v46 }
 0x2d9   : > { %v3665_v12 = vpop.eup %3664 }
 0x2da   : > { %1702 = vmatmul.mubr.bf16.gmra.mxu1 %v1367_v54  ;;  %3503 = vmatprep.mubr.bf16.mxu0 %v1367_v54  ;;  %v1276_v2 = vmul.f32 %v3665_v12, %v4474_v1  ;;  %v1351_v62 = vadd.f32 %v4419_v14, %v1313_v17 }
 0x2db   : > { %1711 = vmatprep.mubr.bf16.mxu1 %v3744_v59 }
 0x2dc   : > { %v1314_v5 = vmul.f32 %v4407_v47, %v1276_v2 }
 0x2de   : > { %v1352_v58 = vadd.f32 %v4419_v14, %v1314_v5 }
 0x2e0   : > { %v1368_v52 = vpack.c.bf16 %v1352_v58, %v1351_v62 }
 0x2e2   : > { %1712 = vmatmul.mubr.bf16.gmra.mxu1 %v1368_v52  ;;  %3504 = vmatmul.mubr.bf16.gmra.mxu0 %v1368_v52 }
 0x2e7   : > { %v1563_v3 = vpop.f32.mrf.mxu1 }
 0x2e8   : > { %v3278_v59 = vpack.c.bf16 %v1563_v3, %v1563_v3 }
 0x2e9   : > { %v1565_v47 = vpop.f32.mrf.mxu1 }
 0x2ea   : > { %2012 = vst.msk [vmem:[%s4568_s13] sm:$0xf] %vm2011_vm1, %v3278_v59  ;;  %v3310_v14 = vpack.c.bf16 %v1565_v47, %v1565_v47  ;;  %2364 = vrot.lane.b32.xlu0 %v3278_v59, %s5360_s21 }
 0x2eb   : > { %v1567_v1 = vpop.f32.mrf.mxu1 }
 0x2ec   : > { %2172 = vst.msk [vmem:[%s4574_s23] sm:$0xf] %vm2011_vm1, %v3310_v14  ;;  %v3279_v20 = vpack.c.bf16 %v1567_v1, %v1567_v1 }
 0x2ed   : > { %v1569_v18 = vpop.f32.mrf.mxu1 }
 0x2ee   : > { %2013 = vst.msk [vmem:[%s4568_s13 + $0x4] sm:$0xf] %vm2011_vm1, %v3279_v20  ;;  %v3311_v33 = vpack.c.bf16 %v1569_v18, %v1569_v18  ;;  %2366 = vrot.lane.b32.xlu1 %v3279_v20, %s5360_s21 }
 0x2ef   : > { %v1573_v9 = vpop.f32.mrf.mxu1  ;;  %v3477_v40 = vpop.f32.mrf.mxu0 }
 0x2f0   : > { %2173 = vst.msk [vmem:[%s4574_s23 + $0x4] sm:$0xf] %vm2011_vm1, %v3311_v33  ;;  %v3280_v35 = vpack.c.bf16 %v1573_v9, %v1573_v9  ;;  %v3344_v60 = vpack.c.bf16 %v3477_v40, %v3477_v40 }
 0x2f1   : > { %v1575_v25 = vpop.f32.mrf.mxu1  ;;  %v1756_v16 = vpop.f32.mrf.mxu0 }
 0x2f2   : > { %2014 = vst.msk [vmem:[%s4568_s13 + $0x8] sm:$0xf] %vm2011_vm1, %v3280_v35  ;;  %2334 = vst.msk [vmem:[%s4588_s24 + $0x8] sm:$0xf] %vm2011_vm1, %v3344_v60  ;;  %v3312_v29 = vpack.c.bf16 %v1575_v25, %v1575_v25  ;;  %v3342_v24 = vpack.c.bf16 %v1756_v16, %v1756_v16  ;;  %2626 = vrot.lane.b32.xlu0 %v3344_v60, %s5360_s21 }
 0x2f3   : > { %v1577_v32 = vpop.f32.mrf.mxu1  ;;  %v3478_v21 = vpop.f32.mrf.mxu0 }
 0x2f4   : > { %2174 = vst.msk [vmem:[%s4574_s23 + $0x8] sm:$0xf] %vm2011_vm1, %v3312_v29  ;;  %2332 = vst.msk [vmem:[%s4588_s24] sm:$0xf] %vm2011_vm1, %v3342_v24  ;;  %v3281_v57 = vpack.c.bf16 %v1577_v32, %v1577_v32  ;;  %v3345_v43 = vpack.c.bf16 %v3478_v21, %v3478_v21 }
 0x2f5   : > { %v1579_v22 = vpop.f32.mrf.mxu1  ;;  %v1759_v28 = vpop.f32.mrf.mxu0 }
 0x2f6   : > { %2015 = vst.msk [vmem:[%s4568_s13 + $0xc] sm:$0xf] %vm2011_vm1, %v3281_v57  ;;  %2335 = vst.msk [vmem:[%s4588_s24 + $0xc] sm:$0xf] %vm2011_vm1, %v3345_v43  ;;  %v3313_v34 = vpack.c.bf16 %v1579_v22, %v1579_v22  ;;  %v3343_v26 = vpack.c.bf16 %v1759_v28, %v1759_v28  ;;  %2628 = vrot.lane.b32.xlu1 %v3345_v43, %s5360_s21  ;;  %2493 = vrot.lane.b32.xlu0 %v3310_v14, %s5360_s21 }
 0x2f7   : > { %v1583_v37 = vpop.f32.mrf.mxu1 }
 0x2f8   : > { %2175 = vst.msk [vmem:[%s4574_s23 + $0xc] sm:$0xf] %vm2011_vm1, %v3313_v34  ;;  %2333 = vst.msk [vmem:[%s4588_s24 + $0x4] sm:$0xf] %vm2011_vm1, %v3343_v26  ;;  %v3282_v45 = vpack.c.bf16 %v1583_v37, %v1583_v37 }
 0x2f9   : > { %v1585_v42 = vpop.f32.mrf.mxu1 }
 0x2fa   : > { %2016 = vst.msk [vmem:[%s4568_s13 + $0x10] sm:$0xf] %vm2011_vm1, %v3282_v45  ;;  %v4613_v39 = vpack.c.bf16 %v1585_v42, %v1585_v42  ;;  %2495 = vrot.lane.b32.xlu1 %v3311_v33, %s5360_s21  ;;  %2622 = vrot.lane.b32.xlu0 %v3342_v24, %s5360_s21 }
 0x2fb   : > { %v1587_v49 = vpop.f32.mrf.mxu1 }
 0x2fc   : > { %2176 = vst.msk [vmem:[%s4574_s23 + $0x10] sm:$0xf] %vm2011_vm1, %v4613_v39  ;;  %v4620_v10 = vpack.c.bf16 %v1587_v49, %v1587_v49 }
 0x2fd   : > { %v1589_v38 = vpop.f32.mrf.mxu1 }
 0x2fe   : > { %2017 = vst.msk [vmem:[%s4568_s13 + $0x14] sm:$0xf] %vm2011_vm1, %v4620_v10  ;;  %v4625_v53 = vpack.c.bf16 %v1589_v38, %v1589_v38  ;;  %2624 = vrot.lane.b32.xlu1 %v3343_v26, %s5360_s21 }
 0x2ff   : > { %v1593_v8 = vpop.f32.mrf.mxu1  ;;  %v3481_v4 = vpop.f32.mrf.mxu0 }
 0x300   : > { %2177 = vst.msk [vmem:[%s4574_s23 + $0x14] sm:$0xf] %vm2011_vm1, %v4625_v53  ;;  %v4631_v55 = vpack.c.bf16 %v1593_v8, %v1593_v8  ;;  %v3348_v30 = vpack.c.bf16 %v3481_v4, %v3481_v4 }
 0x301   : > { %v1595_v15 = vpop.f32.mrf.mxu1  ;;  %v1772_v41 = vpop.f32.mrf.mxu0 }
 0x302   : > { %2018 = vst.msk [vmem:[%s4568_s13 + $0x18] sm:$0xf] %vm2011_vm1, %v4631_v55  ;;  %2338 = vst.msk [vmem:[%s4588_s24 + $0x18] sm:$0xf] %vm2011_vm1, %v3348_v30  ;;  %v4638_v50 = vpack.c.bf16 %v1595_v15, %v1595_v15  ;;  %v3346_v61 = vpack.c.bf16 %v1772_v41, %v1772_v41  ;;  %2368 = vrot.lane.b32.xlu1 %v3280_v35, %s5360_s21  ;;  %2634 = vrot.lane.b32.xlu0 %v3348_v30, %s5360_s21 }
 0x303   : > { %v1597_v0 = vpop.f32.mrf.mxu1  ;;  %v3482_v63 = vpop.f32.mrf.mxu0 }
 0x304   : > { %2178 = vst.msk [vmem:[%s4574_s23 + $0x18] sm:$0xf] %vm2011_vm1, %v4638_v50  ;;  %2336 = vst.msk [vmem:[%s4588_s24 + $0x10] sm:$0xf] %vm2011_vm1, %v3346_v61  ;;  %v4647_v7 = vpack.c.bf16 %v1597_v0, %v1597_v0  ;;  %v3349_v51 = vpack.c.bf16 %v3482_v63, %v3482_v63 }
 0x305   : > { %v1599_v48 = vpop.f32.mrf.mxu1  ;;  %v1775_v44 = vpop.f32.mrf.mxu0 }
 0x306   : > { %2019 = vst.msk [vmem:[%s4568_s13 + $0x1c] sm:$0xf] %vm2011_vm1, %v4647_v7  ;;  %2339 = vst.msk [vmem:[%s4588_s24 + $0x1c] sm:$0xf] %vm2011_vm1, %v3349_v51  ;;  %v4654_v11 = vpack.c.bf16 %v1599_v48, %v1599_v48  ;;  %v3347_v13 = vpack.c.bf16 %v1775_v44, %v1775_v44  ;;  %2370 = vrot.lane.b32.xlu1 %v3281_v57, %s5360_s21  ;;  %2497 = vrot.lane.b32.xlu0 %v3312_v29, %s5360_s21 }
 0x307   : > { %v1603_v19 = vpop.f32.mrf.mxu1 }
 0x308   : > { %2179 = vst.msk [vmem:[%s4574_s23 + $0x1c] sm:$0xf] %vm2011_vm1, %v4654_v11  ;;  %2337 = vst.msk [vmem:[%s4588_s24 + $0x14] sm:$0xf] %vm2011_vm1, %v3347_v13  ;;  %v4663_v27 = vpack.c.bf16 %v1603_v19, %v1603_v19 }
 0x309   : > { %v1605_v6 = vpop.f32.mrf.mxu1 }
 0x30a   : > { %2020 = vst.msk [vmem:[%s4568_s13 + $0x20] sm:$0xf] %vm2011_vm1, %v4663_v27  ;;  %v4668_v31 = vpack.c.bf16 %v1605_v6, %v1605_v6  ;;  %2636 = vrot.lane.b32.xlu1 %v3349_v51, %s5360_s21  ;;  %2630 = vrot.lane.b32.xlu0 %v3346_v61, %s5360_s21 }
 0x30b   : > { %v1607_v36 = vpop.f32.mrf.mxu1 }
 0x30c   : > { %2180 = vst.msk [vmem:[%s4574_s23 + $0x20] sm:$0xf] %vm2011_vm1, %v4668_v31  ;;  %v4675_v23 = vpack.c.bf16 %v1607_v36, %v1607_v36 }
 0x30d   : > { %v1609_v56 = vpop.f32.mrf.mxu1 }
 0x30e   : > { %2021 = vst.msk [vmem:[%s4568_s13 + $0x24] sm:$0xf] %vm2011_vm1, %v4675_v23  ;;  %v4680_v46 = vpack.c.bf16 %v1609_v56, %v1609_v56  ;;  %2499 = vrot.lane.b32.xlu1 %v3313_v34, %s5360_s21  ;;  %2372 = vrot.lane.b32.xlu0 %v3282_v45, %s5360_s21  ;;  %v3485_v54 = vpop.f32.mrf.mxu0 }
 0x30f   : > { %v1613_v12 = vpop.f32.mrf.mxu1  ;;  %v3352_v2 = vpack.c.bf16 %v3485_v54, %v3485_v54 }
 0x310   : > { %2181 = vst.msk [vmem:[%s4574_s23 + $0x24] sm:$0xf] %vm2011_vm1, %v4680_v46  ;;  %v4687_v17 = vpack.c.bf16 %v1613_v12, %v1613_v12  ;;  %v1788_v5 = vpop.f32.mrf.mxu0 }
 0x311   : > { %2342 = vst.msk [vmem:[%s4588_s24 + $0x28] sm:$0xf] %vm2011_vm1, %v3352_v2  ;;  %v1615_v62 = vpop.f32.mrf.mxu1  ;;  %v3350_v58 = vpack.c.bf16 %v1788_v5, %v1788_v5 }
 0x312   : > { %2022 = vst.msk [vmem:[%s4568_s13 + $0x28] sm:$0xf] %vm2011_vm1, %v4687_v17  ;;  %v4694_v52 = vpack.c.bf16 %v1615_v62, %v1615_v62  ;;  %2632 = vrot.lane.b32.xlu1 %v3347_v13, %s5360_s21  ;;  %2642 = vrot.lane.b32.xlu0 %v3352_v2, %s5360_s21  ;;  %v3486_v3 = vpop.f32.mrf.mxu0 }
 0x313   : > { %2340 = vst.msk [vmem:[%s4588_s24 + $0x20] sm:$0xf] %vm2011_vm1, %v3350_v58  ;;  %v1617_v59 = vpop.f32.mrf.mxu1  ;;  %v3353_v47 = vpack.c.bf16 %v3486_v3, %v3486_v3 }
 0x314   : > { %2182 = vst.msk [vmem:[%s4574_s23 + $0x28] sm:$0xf] %vm2011_vm1, %v4694_v52  ;;  %v4703_v14 = vpack.c.bf16 %v1617_v59, %v1617_v59  ;;  %v1791_v1 = vpop.f32.mrf.mxu0 }
 0x315   : > { %2343 = vst.msk [vmem:[%s4588_s24 + $0x2c] sm:$0xf] %vm2011_vm1, %v3353_v47  ;;  %v1619_v20 = vpop.f32.mrf.mxu1  ;;  %v3351_v18 = vpack.c.bf16 %v1791_v1, %v1791_v1 }
 0x316   : > { %2023 = vst.msk [vmem:[%s4568_s13 + $0x2c] sm:$0xf] %vm2011_vm1, %v4703_v14  ;;  %v4710_v33 = vpack.c.bf16 %v1619_v20, %v1619_v20  ;;  %2374 = vrot.lane.b32.xlu1 %v4620_v10, %s5360_s21  ;;  %2501 = vrot.lane.b32.xlu0 %v4613_v39, %s5360_s21 }
 0x317   : > { %2341 = vst.msk [vmem:[%s4588_s24 + $0x24] sm:$0xf] %vm2011_vm1, %v3351_v18  ;;  %v1623_v9 = vpop.f32.mrf.mxu1 }
 0x318   : > { %2183 = vst.msk [vmem:[%s4574_s23 + $0x2c] sm:$0xf] %vm2011_vm1, %v4710_v33  ;;  %v4721_v40 = vpack.c.bf16 %v1623_v9, %v1623_v9 }
 0x319   : > { %v1625_v35 = vpop.f32.mrf.mxu1 }
 0x31a   : > { %2024 = vst.msk [vmem:[%s4568_s13 + $0x30] sm:$0xf] %vm2011_vm1, %v4721_v40  ;;  %v4726_v60 = vpack.c.bf16 %v1625_v35, %v1625_v35  ;;  %2644 = vrot.lane.b32.xlu1 %v3353_v47, %s5360_s21  ;;  %2638 = vrot.lane.b32.xlu0 %v3350_v58, %s5360_s21  ;;  %v3489_v25 = vpop.f32.mrf.mxu0 }
 0x31b   : > { %v1627_v16 = vpop.f32.mrf.mxu1  ;;  %v3356_v29 = vpack.c.bf16 %v3489_v25, %v3489_v25 }
 0x31c   : > { %2184 = vst.msk [vmem:[%s4574_s23 + $0x30] sm:$0xf] %vm2011_vm1, %v4726_v60  ;;  %v4733_v24 = vpack.c.bf16 %v1627_v16, %v1627_v16  ;;  %v1804_v32 = vpop.f32.mrf.mxu0 }
 0x31d   : > { %2346 = vst.msk [vmem:[%s4588_s24 + $0x38] sm:$0xf] %vm2011_vm1, %v3356_v29  ;;  %v1629_v21 = vpop.f32.mrf.mxu1  ;;  %v3354_v57 = vpack.c.bf16 %v1804_v32, %v1804_v32 }
 0x31e   : > { %2025 = vst.msk [vmem:[%s4568_s13 + $0x34] sm:$0xf] %vm2011_vm1, %v4733_v24  ;;  %v4740_v43 = vpack.c.bf16 %v1629_v21, %v1629_v21  ;;  %2503 = vrot.lane.b32.xlu1 %v4625_v53, %s5360_s21  ;;  %2376 = vrot.lane.b32.xlu0 %v4631_v55, %s5360_s21  ;;  %v3490_v22 = vpop.f32.mrf.mxu0 }
 0x31f   : > { %2344 = vst.msk [vmem:[%s4588_s24 + $0x30] sm:$0xf] %vm2011_vm1, %v3354_v57  ;;  %v1633_v28 = vpop.f32.mrf.mxu1  ;;  %v3357_v34 = vpack.c.bf16 %v3490_v22, %v3490_v22 }
 0x320   : > { %2185 = vst.msk [vmem:[%s4574_s23 + $0x34] sm:$0xf] %vm2011_vm1, %v4740_v43  ;;  %v4751_v26 = vpack.c.bf16 %v1633_v28, %v1633_v28  ;;  %v1807_v37 = vpop.f32.mrf.mxu0 }
 0x321   : > { %2347 = vst.msk [vmem:[%s4588_s24 + $0x3c] sm:$0xf] %vm2011_vm1, %v3357_v34  ;;  %v1635_v45 = vpop.f32.mrf.mxu1  ;;  %v3355_v42 = vpack.c.bf16 %v1807_v37, %v1807_v37 }
 0x322   : > { %2026 = vst.msk [vmem:[%s4568_s13 + $0x38] sm:$0xf] %vm2011_vm1, %v4751_v26  ;;  %v4758_v39 = vpack.c.bf16 %v1635_v45, %v1635_v45  ;;  %2640 = vrot.lane.b32.xlu1 %v3351_v18, %s5360_s21  ;;  %2650 = vrot.lane.b32.xlu0 %v3356_v29, %s5360_s21  ;;  %v3493_v49 = vpop.f32.mrf.mxu0 }
 0x323   : > { %2345 = vst.msk [vmem:[%s4588_s24 + $0x34] sm:$0xf] %vm2011_vm1, %v3355_v42  ;;  %v1637_v10 = vpop.f32.mrf.mxu1  ;;  %v3360_v38 = vpack.c.bf16 %v3493_v49, %v3493_v49 }
 0x324   : > { %2186 = vst.msk [vmem:[%s4574_s23 + $0x38] sm:$0xf] %vm2011_vm1, %v4758_v39  ;;  %v4767_v53 = vpack.c.bf16 %v1637_v10, %v1637_v10  ;;  %v1820_v8 = vpop.f32.mrf.mxu0 }
 0x325   : > { %2350 = vst.msk [vmem:[%s4588_s24 + $0x48] sm:$0xf] %vm2011_vm1, %v3360_v38  ;;  %v1639_v4 = vpop.f32.mrf.mxu1  ;;  %v3358_v55 = vpack.c.bf16 %v1820_v8, %v1820_v8 }
 0x326   : > { %2027 = vst.msk [vmem:[%s4568_s13 + $0x3c] sm:$0xf] %vm2011_vm1, %v4767_v53  ;;  %v4774_v30 = vpack.c.bf16 %v1639_v4, %v1639_v4  ;;  %2378 = vrot.lane.b32.xlu1 %v4647_v7, %s5360_s21  ;;  %2505 = vrot.lane.b32.xlu0 %v4638_v50, %s5360_s21  ;;  %v3494_v15 = vpop.f32.mrf.mxu0 }
 0x327   : > { %2348 = vst.msk [vmem:[%s4588_s24 + $0x40] sm:$0xf] %vm2011_vm1, %v3358_v55  ;;  %v1643_v41 = vpop.f32.mrf.mxu1  ;;  %v3361_v61 = vpack.c.bf16 %v3494_v15, %v3494_v15 }
 0x328   : > { %2187 = vst.msk [vmem:[%s4574_s23 + $0x3c] sm:$0xf] %vm2011_vm1, %v4774_v30  ;;  %v4785_v0 = vpack.c.bf16 %v1643_v41, %v1643_v41  ;;  %v1823_v63 = vpop.f32.mrf.mxu0 }
 0x329   : > { %2351 = vst.msk [vmem:[%s4588_s24 + $0x4c] sm:$0xf] %vm2011_vm1, %v3361_v61  ;;  %v1645_v7 = vpop.f32.mrf.mxu1  ;;  %v3359_v51 = vpack.c.bf16 %v1823_v63, %v1823_v63 }
 0x32a   : > { %2028 = vst.msk [vmem:[%s4568_s13 + $0x40] sm:$0xf] %vm2011_vm1, %v4785_v0  ;;  %v4792_v50 = vpack.c.bf16 %v1645_v7, %v1645_v7  ;;  %2646 = vrot.lane.b32.xlu0 %v3354_v57, %s5360_s21  ;;  %2652 = vrot.lane.b32.xlu1 %v3357_v34, %s5360_s21 }
 0x32b   : > { %2349 = vst.msk [vmem:[%s4588_s24 + $0x44] sm:$0xf] %vm2011_vm1, %v3359_v51  ;;  %v1647_v48 = vpop.f32.mrf.mxu1 }
 0x32c   : > { %2188 = vst.msk [vmem:[%s4574_s23 + $0x40] sm:$0xf] %vm2011_vm1, %v4792_v50  ;;  %v4801_v44 = vpack.c.bf16 %v1647_v48, %v1647_v48 }
 0x32d   : > { %v1649_v13 = vpop.f32.mrf.mxu1 }
 0x32e   : > { %2029 = vst.msk [vmem:[%s4568_s13 + $0x44] sm:$0xf] %vm2011_vm1, %v4801_v44  ;;  %v4806_v19 = vpack.c.bf16 %v1649_v13, %v1649_v13  ;;  %2380 = vrot.lane.b32.xlu0 %v4663_v27, %s5360_s21  ;;  %2507 = vrot.lane.b32.xlu1 %v4654_v11, %s5360_s21 }
 0x32f   : > { %v1653_v6 = vpop.f32.mrf.mxu1 }
 0x330   : > { %2189 = vst.msk [vmem:[%s4574_s23 + $0x44] sm:$0xf] %vm2011_vm1, %v4806_v19  ;;  %v4815_v36 = vpack.c.bf16 %v1653_v6, %v1653_v6 }
 0x331   : > { %v1655_v56 = vpop.f32.mrf.mxu1 }
 0x332   : > { %2030 = vst.msk [vmem:[%s4568_s13 + $0x48] sm:$0xf] %vm2011_vm1, %v4815_v36  ;;  %v4820_v54 = vpack.c.bf16 %v1655_v56, %v1655_v56  ;;  %2648 = vrot.lane.b32.xlu1 %v3355_v42, %s5360_s21  ;;  %2658 = vrot.lane.b32.xlu0 %v3360_v38, %s5360_s21 }
 0x333   : > { %v1657_v27 = vpop.f32.mrf.mxu1 }
 0x334   : > { %2190 = vst.msk [vmem:[%s4574_s23 + $0x48] sm:$0xf] %vm2011_vm1, %v4820_v54  ;;  %v4827_v11 = vpack.c.bf16 %v1657_v27, %v1657_v27 }
 0x335   : > { %v1659_v12 = vpop.f32.mrf.mxu1 }
 0x336   : > { %2031 = vst.msk [vmem:[%s4568_s13 + $0x4c] sm:$0xf] %vm2011_vm1, %v4827_v11  ;;  %v4832_v2 = vpack.c.bf16 %v1659_v12, %v1659_v12  ;;  %2382 = vrot.lane.b32.xlu1 %v4675_v23, %s5360_s21  ;;  %2509 = vrot.lane.b32.xlu0 %v4668_v31, %s5360_s21 }
 0x338   : > { %2191 = vst.msk [vmem:[%s4574_s23 + $0x4c] sm:$0xf] %vm2011_vm1, %v4832_v2 }
 0x33a   : > { %2654 = vrot.lane.b32.xlu0 %v3358_v55, %s5360_s21  ;;  %2660 = vrot.lane.b32.xlu1 %v3361_v61, %s5360_s21 }
 0x33e   : > { %2384 = vrot.lane.b32.xlu0 %v4687_v17, %s5360_s21  ;;  %2511 = vrot.lane.b32.xlu1 %v4680_v46, %s5360_s21 }
 0x342   : > { %2656 = vrot.lane.b32.xlu1 %v3359_v51, %s5360_s21 }
 0x346   : > { %2386 = vrot.lane.b32.xlu1 %v4703_v14, %s5360_s21 }
 0x35c   : > { %v2365_v31 = vpop.permute.xlu0 %2364 }
 0x35d   : > { %3173 = vst.msk [vmem:[%s4568_s13 + $0x80] sm:$0xf] %vm2011_vm1, %v2365_v31 }
 0x360   : > { %v2367_v23 = vpop.permute.xlu1 %2366 }
 0x361   : > { %3174 = vst.msk [vmem:[%s4568_s13 + $0x84] sm:$0xf] %vm2011_vm1, %v2367_v23 }
 0x364   : > { %v2627_v17 = vpop.permute.xlu0 %2626 }
 0x365   : > { %3239 = vst.msk [vmem:[%s4588_s24 + $0x88] sm:$0xf] %vm2011_vm1, %v2627_v17 }
 0x368   : > { %v2629_v5 = vpop.permute.xlu1 %2628  ;;  %v2494_v46 = vpop.permute.xlu0 %2493 }
 0x369   : > { %3240 = vst.msk [vmem:[%s4588_s24 + $0x8c] sm:$0xf] %vm2011_vm1, %v2629_v5  ;;  %3205 = vst.msk [vmem:[%s4574_s23 + $0x80] sm:$0xf] %vm2011_vm1, %v2494_v46 }
 0x36c   : > { %v2496_v62 = vpop.permute.xlu1 %2495  ;;  %v2623_v58 = vpop.permute.xlu0 %2622 }
 0x36d   : > { %3206 = vst.msk [vmem:[%s4574_s23 + $0x84] sm:$0xf] %vm2011_vm1, %v2496_v62  ;;  %3237 = vst.msk [vmem:[%s4588_s24 + $0x80] sm:$0xf] %vm2011_vm1, %v2623_v58 }
 0x370   : > { %v2625_v3 = vpop.permute.xlu1 %2624 }
 0x371   : > { %3238 = vst.msk [vmem:[%s4588_s24 + $0x84] sm:$0xf] %vm2011_vm1, %v2625_v3 }
 0x374   : > { %v2369_v59 = vpop.permute.xlu1 %2368  ;;  %v2635_v47 = vpop.permute.xlu0 %2634 }
 0x375   : > { %3175 = vst.msk [vmem:[%s4568_s13 + $0x88] sm:$0xf] %vm2011_vm1, %v2369_v59  ;;  %3243 = vst.msk [vmem:[%s4588_s24 + $0x98] sm:$0xf] %vm2011_vm1, %v2635_v47 }
 0x378   : > { %v2371_v14 = vpop.permute.xlu1 %2370  ;;  %v2498_v1 = vpop.permute.xlu0 %2497 }
 0x379   : > { %3176 = vst.msk [vmem:[%s4568_s13 + $0x8c] sm:$0xf] %vm2011_vm1, %v2371_v14  ;;  %3207 = vst.msk [vmem:[%s4574_s23 + $0x88] sm:$0xf] %vm2011_vm1, %v2498_v1 }
 0x37a   : > { %v1663_v20 = vpop.f32.mrf.mxu1 }
 0x37b   : > { %v4874_v18 = vpack.c.bf16 %v1663_v20, %v1663_v20 }
 0x37c   : > { %v2637_v9 = vpop.permute.xlu1 %2636  ;;  %v2631_v35 = vpop.permute.xlu0 %2630 }
 0x37d   : > { %2032 = vst.msk [vmem:[%s4568_s13 + $0x50] sm:$0xf] %vm2011_vm1, %v4874_v18  ;;  %3244 = vst.msk [vmem:[%s4588_s24 + $0x9c] sm:$0xf] %vm2011_vm1, %v2637_v9  ;;  %v1665_v25 = vpop.f32.mrf.mxu1 }
 0x37e   : > { %3241 = vst.msk [vmem:[%s4588_s24 + $0x90] sm:$0xf] %vm2011_vm1, %v2631_v35  ;;  %v4883_v16 = vpack.c.bf16 %v1665_v25, %v1665_v25 }
 0x37f   : > { %v1667_v29 = vpop.f32.mrf.mxu1 }
 0x380   : > { %2192 = vst.msk [vmem:[%s4574_s23 + $0x50] sm:$0xf] %vm2011_vm1, %v4883_v16  ;;  %v4888_v32 = vpack.c.bf16 %v1667_v29, %v1667_v29  ;;  %v2500_v21 = vpop.permute.xlu1 %2499  ;;  %v2373_v57 = vpop.permute.xlu0 %2372 }
 0x381   : > { %3208 = vst.msk [vmem:[%s4574_s23 + $0x8c] sm:$0xf] %vm2011_vm1, %v2500_v21  ;;  %3177 = vst.msk [vmem:[%s4568_s13 + $0x90] sm:$0xf] %vm2011_vm1, %v2373_v57  ;;  %v1669_v22 = vpop.f32.mrf.mxu1 }
 0x382   : > { %2033 = vst.msk [vmem:[%s4568_s13 + $0x54] sm:$0xf] %vm2011_vm1, %v4888_v32  ;;  %v4897_v28 = vpack.c.bf16 %v1669_v22, %v1669_v22  ;;  %v3497_v34 = vpop.f32.mrf.mxu0 }
 0x383   : > { %v1673_v37 = vpop.f32.mrf.mxu1  ;;  %v3364_v45 = vpack.c.bf16 %v3497_v34, %v3497_v34 }
 0x384   : > { %2193 = vst.msk [vmem:[%s4574_s23 + $0x54] sm:$0xf] %vm2011_vm1, %v4897_v28  ;;  %v4902_v42 = vpack.c.bf16 %v1673_v37, %v1673_v37  ;;  %v2633_v49 = vpop.permute.xlu1 %2632  ;;  %v2643_v10 = vpop.permute.xlu0 %2642 }
 0x385   : > { %2354 = vst.msk [vmem:[%s4588_s24 + $0x58] sm:$0xf] %vm2011_vm1, %v3364_v45  ;;  %3242 = vst.msk [vmem:[%s4588_s24 + $0x94] sm:$0xf] %vm2011_vm1, %v2633_v49  ;;  %v1675_v38 = vpop.f32.mrf.mxu1  ;;  %v1836_v8 = vpop.f32.mrf.mxu0  ;;  %2666 = vrot.lane.b32.xlu0 %v3364_v45, %s5360_s21 }
 0x386   : > { %3247 = vst.msk [vmem:[%s4588_s24 + $0xa8] sm:$0xf] %vm2011_vm1, %v2643_v10  ;;  %2034 = vst.msk [vmem:[%s4568_s13 + $0x58] sm:$0xf] %vm2011_vm1, %v4902_v42  ;;  %v4914_v4 = vpack.c.bf16 %v1675_v38, %v1675_v38  ;;  %v3362_v55 = vpack.c.bf16 %v1836_v8, %v1836_v8 }
 0x387   : > { %v1677_v15 = vpop.f32.mrf.mxu1  ;;  %v3498_v41 = vpop.f32.mrf.mxu0 }
 0x388   : > { %2194 = vst.msk [vmem:[%s4574_s23 + $0x58] sm:$0xf] %vm2011_vm1, %v4914_v4  ;;  %2352 = vst.msk [vmem:[%s4588_s24 + $0x50] sm:$0xf] %vm2011_vm1, %v3362_v55  ;;  %v4921_v61 = vpack.c.bf16 %v1677_v15, %v1677_v15  ;;  %v3365_v63 = vpack.c.bf16 %v3498_v41, %v3498_v41  ;;  %v2375_v7 = vpop.permute.xlu1 %2374  ;;  %v2502_v51 = vpop.permute.xlu0 %2501 }
 0x389   : > { %3178 = vst.msk [vmem:[%s4568_s13 + $0x94] sm:$0xf] %vm2011_vm1, %v2375_v7  ;;  %3209 = vst.msk [vmem:[%s4574_s23 + $0x90] sm:$0xf] %vm2011_vm1, %v2502_v51  ;;  %v1679_v48 = vpop.f32.mrf.mxu1  ;;  %v1839_v13 = vpop.f32.mrf.mxu0  ;;  %2513 = vrot.lane.b32.xlu0 %v4694_v52, %s5360_s21 }
 0x38a   : > { %2035 = vst.msk [vmem:[%s4568_s13 + $0x5c] sm:$0xf] %vm2011_vm1, %v4921_v61  ;;  %2355 = vst.msk [vmem:[%s4588_s24 + $0x5c] sm:$0xf] %vm2011_vm1, %v3365_v63  ;;  %v4934_v6 = vpack.c.bf16 %v1679_v48, %v1679_v48  ;;  %v3363_v56 = vpack.c.bf16 %v1839_v13, %v1839_v13  ;;  %2668 = vrot.lane.b32.xlu1 %v3365_v63, %s5360_s21 }
 0x38b   : > { %v1683_v27 = vpop.f32.mrf.mxu1 }
 0x38c   : > { %2195 = vst.msk [vmem:[%s4574_s23 + $0x5c] sm:$0xf] %vm2011_vm1, %v4934_v6  ;;  %2353 = vst.msk [vmem:[%s4588_s24 + $0x54] sm:$0xf] %vm2011_vm1, %v3363_v56  ;;  %v4942_v52 = vpack.c.bf16 %v1683_v27, %v1683_v27  ;;  %v2645_v12 = vpop.permute.xlu1 %2644  ;;  %v2639_v31 = vpop.permute.xlu0 %2638 }
 0x38d   : > { %3248 = vst.msk [vmem:[%s4588_s24 + $0xac] sm:$0xf] %vm2011_vm1, %v2645_v12  ;;  %3245 = vst.msk [vmem:[%s4588_s24 + $0xa0] sm:$0xf] %vm2011_vm1, %v2639_v31  ;;  %v1685_v23 = vpop.f32.mrf.mxu1  ;;  %2662 = vrot.lane.b32.xlu0 %v3362_v55, %s5360_s21 }
 0x38e   : > { %2036 = vst.msk [vmem:[%s4568_s13 + $0x60] sm:$0xf] %vm2011_vm1, %v4942_v52  ;;  %v4952_v17 = vpack.c.bf16 %v1685_v23, %v1685_v23  ;;  %2515 = vrot.lane.b32.xlu1 %v4710_v33, %s5360_s21 }
 0x38f   : > { %v1687_v5 = vpop.f32.mrf.mxu1 }
 0x390   : > { %2196 = vst.msk [vmem:[%s4574_s23 + $0x60] sm:$0xf] %vm2011_vm1, %v4952_v17  ;;  %v4959_v46 = vpack.c.bf16 %v1687_v5, %v1687_v5  ;;  %v2504_v62 = vpop.permute.xlu1 %2503  ;;  %v2377_v58 = vpop.permute.xlu0 %2376 }
 0x391   : > { %3210 = vst.msk [vmem:[%s4574_s23 + $0x94] sm:$0xf] %vm2011_vm1, %v2504_v62  ;;  %3179 = vst.msk [vmem:[%s4568_s13 + $0x98] sm:$0xf] %vm2011_vm1, %v2377_v58  ;;  %v1689_v3 = vpop.f32.mrf.mxu1  ;;  %2388 = vrot.lane.b32.xlu0 %v4721_v40, %s5360_s21 }
 0x392   : > { %2037 = vst.msk [vmem:[%s4568_s13 + $0x64] sm:$0xf] %vm2011_vm1, %v4959_v46  ;;  %v4970_v33 = vpack.c.bf16 %v1689_v3, %v1689_v3  ;;  %2664 = vrot.lane.b32.xlu1 %v3363_v56, %s5360_s21  ;;  %v3501_v59 = vpop.f32.mrf.mxu0 }
 0x393   : > { %v1693_v47 = vpop.f32.mrf.mxu1  ;;  %v3368_v14 = vpack.c.bf16 %v3501_v59, %v3501_v59 }
 0x394   : > { %2197 = vst.msk [vmem:[%s4574_s23 + $0x64] sm:$0xf] %vm2011_vm1, %v4970_v33  ;;  %v4976_v1 = vpack.c.bf16 %v1693_v47, %v1693_v47  ;;  %v2641_v20 = vpop.permute.xlu1 %2640  ;;  %v2651_v40 = vpop.permute.xlu0 %2650 }
 0x395   : > { %2358 = vst.msk [vmem:[%s4588_s24 + $0x68] sm:$0xf] %vm2011_vm1, %v3368_v14  ;;  %3246 = vst.msk [vmem:[%s4588_s24 + $0xa4] sm:$0xf] %vm2011_vm1, %v2641_v20  ;;  %v1695_v9 = vpop.f32.mrf.mxu1  ;;  %v1852_v35 = vpop.f32.mrf.mxu0  ;;  %2674 = vrot.lane.b32.xlu0 %v3368_v14, %s5360_s21 }
 0x396   : > { %3251 = vst.msk [vmem:[%s4588_s24 + $0xb8] sm:$0xf] %vm2011_vm1, %v2651_v40  ;;  %2038 = vst.msk [vmem:[%s4568_s13 + $0x68] sm:$0xf] %vm2011_vm1, %v4976_v1  ;;  %v4988_v25 = vpack.c.bf16 %v1695_v9, %v1695_v9  ;;  %v3366_v29 = vpack.c.bf16 %v1852_v35, %v1852_v35  ;;  %2390 = vrot.lane.b32.xlu1 %v4733_v24, %s5360_s21 }
 0x397   : > { %v1697_v21 = vpop.f32.mrf.mxu1  ;;  %v3502_v57 = vpop.f32.mrf.mxu0 }
 0x398   : > { %2198 = vst.msk [vmem:[%s4574_s23 + $0x68] sm:$0xf] %vm2011_vm1, %v4988_v25  ;;  %2356 = vst.msk [vmem:[%s4588_s24 + $0x60] sm:$0xf] %vm2011_vm1, %v3366_v29  ;;  %v4997_v22 = vpack.c.bf16 %v1697_v21, %v1697_v21  ;;  %v3369_v34 = vpack.c.bf16 %v3502_v57, %v3502_v57  ;;  %v2379_v37 = vpop.permute.xlu1 %2378  ;;  %v2506_v45 = vpop.permute.xlu0 %2505 }
 0x399   : > { %3180 = vst.msk [vmem:[%s4568_s13 + $0x9c] sm:$0xf] %vm2011_vm1, %v2379_v37  ;;  %3211 = vst.msk [vmem:[%s4574_s23 + $0x98] sm:$0xf] %vm2011_vm1, %v2506_v45  ;;  %v1699_v24 = vpop.f32.mrf.mxu1  ;;  %v1855_v49 = vpop.f32.mrf.mxu0  ;;  %2517 = vrot.lane.b32.xlu0 %v4726_v60, %s5360_s21 }
 0x39a   : > { %2039 = vst.msk [vmem:[%s4568_s13 + $0x6c] sm:$0xf] %vm2011_vm1, %v4997_v22  ;;  %2359 = vst.msk [vmem:[%s4588_s24 + $0x6c] sm:$0xf] %vm2011_vm1, %v3369_v34  ;;  %v5010_v10 = vpack.c.bf16 %v1699_v24, %v1699_v24  ;;  %v3367_v38 = vpack.c.bf16 %v1855_v49, %v1855_v49  ;;  %2676 = vrot.lane.b32.xlu1 %v3369_v34, %s5360_s21 }
 0x39b   : > { %v1703_v8 = vpop.f32.mrf.mxu1 }
 0x39c   : > { %2199 = vst.msk [vmem:[%s4574_s23 + $0x6c] sm:$0xf] %vm2011_vm1, %v5010_v10  ;;  %2357 = vst.msk [vmem:[%s4588_s24 + $0x64] sm:$0xf] %vm2011_vm1, %v3367_v38  ;;  %v5018_v60 = vpack.c.bf16 %v1703_v8, %v1703_v8  ;;  %v2653_v55 = vpop.permute.xlu1 %2652  ;;  %v2647_v15 = vpop.permute.xlu0 %2646 }
 0x39d   : > { %3252 = vst.msk [vmem:[%s4588_s24 + $0xbc] sm:$0xf] %vm2011_vm1, %v2653_v55  ;;  %3249 = vst.msk [vmem:[%s4588_s24 + $0xb0] sm:$0xf] %vm2011_vm1, %v2647_v15  ;;  %v1705_v41 = vpop.f32.mrf.mxu1  ;;  %2670 = vrot.lane.b32.xlu0 %v3366_v29, %s5360_s21 }
 0x39e   : > { %2040 = vst.msk [vmem:[%s4568_s13 + $0x70] sm:$0xf] %vm2011_vm1, %v5018_v60  ;;  %v5028_v63 = vpack.c.bf16 %v1705_v41, %v1705_v41  ;;  %2519 = vrot.lane.b32.xlu1 %v4740_v43, %s5360_s21 }
 0x39f   : > { %v1707_v7 = vpop.f32.mrf.mxu1 }
 0x3a0   : > { %2200 = vst.msk [vmem:[%s4574_s23 + $0x70] sm:$0xf] %vm2011_vm1, %v5028_v63  ;;  %v5035_v51 = vpack.c.bf16 %v1707_v7, %v1707_v7  ;;  %v2508_v48 = vpop.permute.xlu1 %2507  ;;  %v2381_v13 = vpop.permute.xlu0 %2380 }
 0x3a1   : > { %3212 = vst.msk [vmem:[%s4574_s23 + $0x9c] sm:$0xf] %vm2011_vm1, %v2508_v48  ;;  %3181 = vst.msk [vmem:[%s4568_s13 + $0xa0] sm:$0xf] %vm2011_vm1, %v2381_v13  ;;  %v1709_v56 = vpop.f32.mrf.mxu1  ;;  %2392 = vrot.lane.b32.xlu0 %v4751_v26, %s5360_s21 }
 0x3a2   : > { %2041 = vst.msk [vmem:[%s4568_s13 + $0x74] sm:$0xf] %vm2011_vm1, %v5035_v51  ;;  %v5046_v43 = vpack.c.bf16 %v1709_v56, %v1709_v56  ;;  %2672 = vrot.lane.b32.xlu1 %v3367_v38, %s5360_s21  ;;  %v3505_v27 = vpop.f32.mrf.mxu0 }
 0x3a3   : > { %v1713_v12 = vpop.f32.mrf.mxu1  ;;  %v5049_v31 = vpack.c.bf16 %v3505_v27, %v3505_v27 }
 0x3a4   : > { %2201 = vst.msk [vmem:[%s4574_s23 + $0x74] sm:$0xf] %vm2011_vm1, %v5046_v43  ;;  %v5054_v23 = vpack.c.bf16 %v1713_v12, %v1713_v12  ;;  %v2649_v26 = vpop.permute.xlu1 %2648  ;;  %v2659_v5 = vpop.permute.xlu0 %2658 }
 0x3a5   : > { %2362 = vst.msk [vmem:[%s4588_s24 + $0x78] sm:$0xf] %vm2011_vm1, %v5049_v31  ;;  %3250 = vst.msk [vmem:[%s4588_s24 + $0xb4] sm:$0xf] %vm2011_vm1, %v2649_v26  ;;  %v1715_v62 = vpop.f32.mrf.mxu1  ;;  %v1868_v58 = vpop.f32.mrf.mxu0  ;;  %2521 = vrot.lane.b32.xlu0 %v4758_v39, %s5360_s21 }
 0x3a6   : > { %3255 = vst.msk [vmem:[%s4588_s24 + $0xc8] sm:$0xf] %vm2011_vm1, %v2659_v5  ;;  %2042 = vst.msk [vmem:[%s4568_s13 + $0x78] sm:$0xf] %vm2011_vm1, %v5054_v23  ;;  %v5068_v3 = vpack.c.bf16 %v1715_v62, %v1715_v62  ;;  %v3370_v59 = vpack.c.bf16 %v1868_v58, %v1868_v58  ;;  %2394 = vrot.lane.b32.xlu1 %v4767_v53, %s5360_s21 }
 0x3a7   : > { %v1717_v47 = vpop.f32.mrf.mxu1  ;;  %v3506_v14 = vpop.f32.mrf.mxu0 }
 0x3a8   : > { %2202 = vst.msk [vmem:[%s4574_s23 + $0x78] sm:$0xf] %vm2011_vm1, %v5068_v3  ;;  %2360 = vst.msk [vmem:[%s4588_s24 + $0x70] sm:$0xf] %vm2011_vm1, %v3370_v59  ;;  %v5077_v39 = vpack.c.bf16 %v1717_v47, %v1717_v47  ;;  %v5079_v20 = vpack.c.bf16 %v3506_v14, %v3506_v14  ;;  %v2383_v40 = vpop.permute.xlu1 %2382  ;;  %v2510_v9 = vpop.permute.xlu0 %2509 }
 0x3a9   : > { %3182 = vst.msk [vmem:[%s4568_s13 + $0xa4] sm:$0xf] %vm2011_vm1, %v2383_v40  ;;  %3213 = vst.msk [vmem:[%s4574_s23 + $0xa0] sm:$0xf] %vm2011_vm1, %v2510_v9  ;;  %v1719_v53 = vpop.f32.mrf.mxu1  ;;  %v1871_v35 = vpop.f32.mrf.mxu0  ;;  %2678 = vrot.lane.b32.xlu0 %v3370_v59, %s5360_s21 }
 0x3aa   : > { %2043 = vst.msk [vmem:[%s4568_s13 + $0x7c] sm:$0xf] %vm2011_vm1, %v5077_v39  ;;  %2363 = vst.msk [vmem:[%s4588_s24 + $0x7c] sm:$0xf] %vm2011_vm1, %v5079_v20  ;;  %v5092_v29 = vpack.c.bf16 %v1719_v53, %v1719_v53  ;;  %v3371_v21 = vpack.c.bf16 %v1871_v35, %v1871_v35  ;;  %2523 = vrot.lane.b32.xlu1 %v4774_v30, %s5360_s21 }
 0x3ac   : > { %2203 = vst.msk [vmem:[%s4574_s23 + $0x7c] sm:$0xf] %vm2011_vm1, %v5092_v29  ;;  %2361 = vst.msk [vmem:[%s4588_s24 + $0x74] sm:$0xf] %vm2011_vm1, %v3371_v21  ;;  %v2661_v57 = vpop.permute.xlu1 %2660  ;;  %v2655_v34 = vpop.permute.xlu0 %2654 }
 0x3ad   : > { %3256 = vst.msk [vmem:[%s4588_s24 + $0xcc] sm:$0xf] %vm2011_vm1, %v2661_v57  ;;  %3253 = vst.msk [vmem:[%s4588_s24 + $0xc0] sm:$0xf] %vm2011_vm1, %v2655_v34  ;;  %2396 = vrot.lane.b32.xlu0 %v4785_v0, %s5360_s21 }
 0x3ae   : > { %2680 = vrot.lane.b32.xlu1 %v3371_v21, %s5360_s21 }
 0x3b0   : > { %v2512_v37 = vpop.permute.xlu1 %2511  ;;  %v2385_v30 = vpop.permute.xlu0 %2384 }
 0x3b1   : > { %3214 = vst.msk [vmem:[%s4574_s23 + $0xa4] sm:$0xf] %vm2011_vm1, %v2512_v37  ;;  %3183 = vst.msk [vmem:[%s4568_s13 + $0xa8] sm:$0xf] %vm2011_vm1, %v2385_v30  ;;  %2525 = vrot.lane.b32.xlu0 %v4792_v50, %s5360_s21 }
 0x3b2   : > { %2398 = vrot.lane.b32.xlu1 %v4801_v44, %s5360_s21 }
 0x3b4   : > { %v2657_v45 = vpop.permute.xlu1 %2656 }
 0x3b5   : > { %3254 = vst.msk [vmem:[%s4588_s24 + $0xc4] sm:$0xf] %vm2011_vm1, %v2657_v45  ;;  %2400 = vrot.lane.b32.xlu0 %v4815_v36, %s5360_s21 }
 0x3b6   : > { %2527 = vrot.lane.b32.xlu1 %v4806_v19, %s5360_s21 }
 0x3b8   : > { %v2387_v0 = vpop.permute.xlu1 %2386 }
 0x3b9   : > { %3184 = vst.msk [vmem:[%s4568_s13 + $0xac] sm:$0xf] %vm2011_vm1, %v2387_v0  ;;  %2529 = vrot.lane.b32.xlu0 %v4820_v54, %s5360_s21 }
 0x3ba   : > { %2402 = vrot.lane.b32.xlu1 %v4827_v11, %s5360_s21 }
 0x3bd   : > { %2404 = vrot.lane.b32.xlu0 %v4874_v18, %s5360_s21 }
 0x3be   : > { %2531 = vrot.lane.b32.xlu1 %v4832_v2, %s5360_s21 }
 0x3c1   : > { %2533 = vrot.lane.b32.xlu0 %v4883_v16, %s5360_s21 }
 0x3c2   : > { %2406 = vrot.lane.b32.xlu1 %v4888_v32, %s5360_s21 }
 0x3c5   : > { %2408 = vrot.lane.b32.xlu0 %v4902_v42, %s5360_s21 }
 0x3c6   : > { %2535 = vrot.lane.b32.xlu1 %v4897_v28, %s5360_s21 }
 0x3c9   : > { %2537 = vrot.lane.b32.xlu0 %v4914_v4, %s5360_s21 }
 0x3ca   : > { %2410 = vrot.lane.b32.xlu1 %v4921_v61, %s5360_s21 }
 0x3cd   : > { %2412 = vrot.lane.b32.xlu0 %v4942_v52, %s5360_s21 }
 0x3ce   : > { %2539 = vrot.lane.b32.xlu1 %v4934_v6, %s5360_s21 }
 0x3d1   : > { %2541 = vrot.lane.b32.xlu0 %v4952_v17, %s5360_s21 }
 0x3d2   : > { %2414 = vrot.lane.b32.xlu1 %v4959_v46, %s5360_s21 }
 0x3d5   : > { %2416 = vrot.lane.b32.xlu0 %v4976_v1, %s5360_s21 }
 0x3d6   : > { %2543 = vrot.lane.b32.xlu1 %v4970_v33, %s5360_s21 }
 0x3d9   : > { %2545 = vrot.lane.b32.xlu0 %v4988_v25, %s5360_s21 }
 0x3da   : > { %2418 = vrot.lane.b32.xlu1 %v4997_v22, %s5360_s21 }
 0x3dd   : > { %2420 = vrot.lane.b32.xlu0 %v5018_v60, %s5360_s21 }
 0x3de   : > { %2547 = vrot.lane.b32.xlu1 %v5010_v10, %s5360_s21 }
 0x3e1   : > { %2549 = vrot.lane.b32.xlu0 %v5028_v63, %s5360_s21 }
 0x3e2   : > { %2422 = vrot.lane.b32.xlu1 %v5035_v51, %s5360_s21 }
 0x3e5   : > { %2424 = vrot.lane.b32.xlu0 %v5054_v23, %s5360_s21 }
 0x3e6   : > { %2551 = vrot.lane.b32.xlu1 %v5046_v43, %s5360_s21 }
 0x3e7   : > { %3679 = shalt.err (!%p3676_p5)
}
 0x3e8   : > { %s3680_s30 = scalar_lea.hbm %s5173_s25, 4096  ;;  %s3684_s12 = scalar_lea.hbm %s5354_s8, 8192 }
 0x3e9   : > { %p3681_p6 = scmp.ne.s32.totalorder %s5173_s25, %s3680_s30  ;;  %p3685_p10 = scmp.lt.s32.totalorder %s5173_s25, %s5354_s8 }
 0x3ea   : > { %p3686_p11 = scmp.lt.s32.totalorder %s3684_s12, %s3680_s30 }
 0x3eb   : > { %p3682_p7 = pnand %p3681_p6, %p3849_p4 }
 0x3ec   : > { %p3687_p12 = por %p3686_p11, %p3685_p10 }
 0x3ed   : > { %p3683_p9 = pneg %p3682_p7 }
 0x3ef   : > { %p3688_p13 = pnand %p3687_p12, %p3683_p9 }
 0x3f1   : > { %3691 = shalt.err (!%p3688_p13)
}
 0x3f2   : > { %s3747_s20 = smov 128   ;;  %s3748_s26 = smov 8  }
 0x3f3   : > { %3507 = dma.vmem_to_hbm [thread:$0]  (%p3849_p4), %s5177_s28, 4096, %s5173_s25, %s5183_s16, %s3747_s20, %s3747_s20, %s3748_s26  }
 0x3f4   : > { %s5371_s21 = smov 64  }
 0x3f5   : > { %2553 = vrot.lane.b32.xlu0 %v5068_v3, %s5371_s21  ;;  %2426 = vrot.lane.b32.xlu1 %v5077_v39, %s5371_s21 }
 0x3f7   : > { %v2667_v50 = vpop.permute.xlu0 %2666 }
 0x3f8   : > { %3259 = vst.msk [vmem:[%s4588_s24 + $0xd8] sm:$0xf] %vm2011_vm1, %v2667_v50 }
 0x3f9   : > { %2682 = vrot.lane.b32.xlu0 %v5049_v31, %s5371_s21  ;;  %2555 = vrot.lane.b32.xlu1 %v5092_v29, %s5371_s21 }
 0x3fb   : > { %v2514_v44 = vpop.permute.xlu0 %2513 }
 0x3fc   : > { %v2669_v19 = vpop.permute.xlu1 %2668  ;;  %3215 = vst.msk [vmem:[%s4574_s23 + $0xa8] sm:$0xf] %vm2011_vm1, %v2514_v44 }
 0x3fd   : > { %2684 = vrot.lane.b32.xlu1 %v5079_v20, %s5371_s21  ;;  %3260 = vst.msk [vmem:[%s4588_s24 + $0xdc] sm:$0xf] %vm2011_vm1, %v2669_v19 }
 0x3ff   : > { %v2663_v36 = vpop.permute.xlu0 %2662 }
 0x400   : > { %v2516_v54 = vpop.permute.xlu1 %2515  ;;  %3257 = vst.msk [vmem:[%s4588_s24 + $0xd0] sm:$0xf] %vm2011_vm1, %v2663_v36 }
 0x401   : > { %3216 = vst.msk [vmem:[%s4574_s23 + $0xac] sm:$0xf] %vm2011_vm1, %v2516_v54 }
 0x403   : > { %v2389_v11 = vpop.permute.xlu0 %2388 }
 0x404   : > { %v2665_v2 = vpop.permute.xlu1 %2664  ;;  %3185 = vst.msk [vmem:[%s4568_s13 + $0xb0] sm:$0xf] %vm2011_vm1, %v2389_v11 }
 0x405   : > { %3258 = vst.msk [vmem:[%s4588_s24 + $0xd4] sm:$0xf] %vm2011_vm1, %v2665_v2 }
 0x407   : > { %v2675_v18 = vpop.permute.xlu0 %2674 }
 0x408   : > { %v2391_v16 = vpop.permute.xlu1 %2390  ;;  %3263 = vst.msk [vmem:[%s4588_s24 + $0xe8] sm:$0xf] %vm2011_vm1, %v2675_v18 }
 0x409   : > { %3186 = vst.msk [vmem:[%s4568_s13 + $0xb4] sm:$0xf] %vm2011_vm1, %v2391_v16 }
 0x40b   : > { %v2518_v32 = vpop.permute.xlu0 %2517 }
 0x40c   : > { %v2677_v28 = vpop.permute.xlu1 %2676  ;;  %3217 = vst.msk [vmem:[%s4574_s23 + $0xb0] sm:$0xf] %vm2011_vm1, %v2518_v32 }
 0x40d   : > { %3264 = vst.msk [vmem:[%s4588_s24 + $0xec] sm:$0xf] %vm2011_vm1, %v2677_v28 }
 0x40f   : > { %v2671_v42 = vpop.permute.xlu0 %2670 }
 0x410   : > { %v2520_v4 = vpop.permute.xlu1 %2519  ;;  %3261 = vst.msk [vmem:[%s4588_s24 + $0xe0] sm:$0xf] %vm2011_vm1, %v2671_v42 }
 0x411   : > { %3218 = vst.msk [vmem:[%s4574_s23 + $0xb4] sm:$0xf] %vm2011_vm1, %v2520_v4 }
 0x413   : > { %v2393_v61 = vpop.permute.xlu0 %2392 }
 0x414   : > { %v2673_v6 = vpop.permute.xlu1 %2672  ;;  %3187 = vst.msk [vmem:[%s4568_s13 + $0xb8] sm:$0xf] %vm2011_vm1, %v2393_v61 }
 0x415   : > { %3262 = vst.msk [vmem:[%s4588_s24 + $0xe4] sm:$0xf] %vm2011_vm1, %v2673_v6 }
 0x417   : > { %v2522_v52 = vpop.permute.xlu0 %2521 }
 0x418   : > { %v2395_v17 = vpop.permute.xlu1 %2394  ;;  %3219 = vst.msk [vmem:[%s4574_s23 + $0xb8] sm:$0xf] %vm2011_vm1, %v2522_v52 }
 0x419   : > { %3188 = vst.msk [vmem:[%s4568_s13 + $0xbc] sm:$0xf] %vm2011_vm1, %v2395_v17 }
 0x41b   : > { %v2679_v46 = vpop.permute.xlu0 %2678 }
 0x41c   : > { %v2524_v33 = vpop.permute.xlu1 %2523  ;;  %3265 = vst.msk [vmem:[%s4588_s24 + $0xf0] sm:$0xf] %vm2011_vm1, %v2679_v46 }
 0x41d   : > { %3220 = vst.msk [vmem:[%s4574_s23 + $0xbc] sm:$0xf] %vm2011_vm1, %v2524_v33 }
 0x41f   : > { %v2397_v1 = vpop.permute.xlu0 %2396 }
 0x420   : > { %v2681_v25 = vpop.permute.xlu1 %2680  ;;  %3189 = vst.msk [vmem:[%s4568_s13 + $0xc0] sm:$0xf] %vm2011_vm1, %v2397_v1 }
 0x421   : > { %3266 = vst.msk [vmem:[%s4588_s24 + $0xf4] sm:$0xf] %vm2011_vm1, %v2681_v25 }
 0x423   : > { %v2526_v22 = vpop.permute.xlu0 %2525 }
 0x424   : > { %v2399_v24 = vpop.permute.xlu1 %2398  ;;  %3221 = vst.msk [vmem:[%s4574_s23 + $0xc0] sm:$0xf] %vm2011_vm1, %v2526_v22 }
 0x425   : > { %3190 = vst.msk [vmem:[%s4568_s13 + $0xc4] sm:$0xf] %vm2011_vm1, %v2399_v24 }
 0x427   : > { %v2401_v49 = vpop.permute.xlu0 %2400 }
 0x428   : > { %v2528_v10 = vpop.permute.xlu1 %2527  ;;  %3191 = vst.msk [vmem:[%s4568_s13 + $0xc8] sm:$0xf] %vm2011_vm1, %v2401_v49 }
 0x429   : > { %3222 = vst.msk [vmem:[%s4574_s23 + $0xc4] sm:$0xf] %vm2011_vm1, %v2528_v10 }
 0x42b   : > { %v2530_v38 = vpop.permute.xlu0 %2529 }
 0x42c   : > { %v2403_v8 = vpop.permute.xlu1 %2402  ;;  %3223 = vst.msk [vmem:[%s4574_s23 + $0xc8] sm:$0xf] %vm2011_vm1, %v2530_v38 }
 0x42d   : > { %3192 = vst.msk [vmem:[%s4568_s13 + $0xcc] sm:$0xf] %vm2011_vm1, %v2403_v8 }
 0x42f   : > { %v2405_v60 = vpop.permute.xlu0 %2404 }
 0x430   : > { %v2532_v55 = vpop.permute.xlu1 %2531  ;;  %3193 = vst.msk [vmem:[%s4568_s13 + $0xd0] sm:$0xf] %vm2011_vm1, %v2405_v60 }
 0x431   : > { %3224 = vst.msk [vmem:[%s4574_s23 + $0xcc] sm:$0xf] %vm2011_vm1, %v2532_v55 }
 0x433   : > { %v2534_v15 = vpop.permute.xlu0 %2533 }
 0x434   : > { %v2407_v41 = vpop.permute.xlu1 %2406  ;;  %3225 = vst.msk [vmem:[%s4574_s23 + $0xd0] sm:$0xf] %vm2011_vm1, %v2534_v15 }
 0x435   : > { %3194 = vst.msk [vmem:[%s4568_s13 + $0xd4] sm:$0xf] %vm2011_vm1, %v2407_v41 }
 0x437   : > { %v2409_v63 = vpop.permute.xlu0 %2408 }
 0x438   : > { %v2536_v7 = vpop.permute.xlu1 %2535  ;;  %3195 = vst.msk [vmem:[%s4568_s13 + $0xd8] sm:$0xf] %vm2011_vm1, %v2409_v63 }
 0x439   : > { %3226 = vst.msk [vmem:[%s4574_s23 + $0xd4] sm:$0xf] %vm2011_vm1, %v2536_v7 }
 0x43b   : > { %v2538_v51 = vpop.permute.xlu0 %2537 }
 0x43c   : > { %v2411_v48 = vpop.permute.xlu1 %2410  ;;  %3227 = vst.msk [vmem:[%s4574_s23 + $0xd8] sm:$0xf] %vm2011_vm1, %v2538_v51 }
 0x43d   : > { %3196 = vst.msk [vmem:[%s4568_s13 + $0xdc] sm:$0xf] %vm2011_vm1, %v2411_v48 }
 0x43f   : > { %v2413_v13 = vpop.permute.xlu0 %2412 }
 0x440   : > { %v2540_v56 = vpop.permute.xlu1 %2539  ;;  %3197 = vst.msk [vmem:[%s4568_s13 + $0xe0] sm:$0xf] %vm2011_vm1, %v2413_v13 }
 0x441   : > { %3228 = vst.msk [vmem:[%s4574_s23 + $0xdc] sm:$0xf] %vm2011_vm1, %v2540_v56 }
 0x443   : > { %v2542_v43 = vpop.permute.xlu0 %2541 }
 0x444   : > { %v2415_v27 = vpop.permute.xlu1 %2414  ;;  %3229 = vst.msk [vmem:[%s4574_s23 + $0xe0] sm:$0xf] %vm2011_vm1, %v2542_v43 }
 0x445   : > { %3198 = vst.msk [vmem:[%s4568_s13 + $0xe4] sm:$0xf] %vm2011_vm1, %v2415_v27 }
 0x447   : > { %v2417_v12 = vpop.permute.xlu0 %2416 }
 0x448   : > { %v2544_v31 = vpop.permute.xlu1 %2543  ;;  %3199 = vst.msk [vmem:[%s4568_s13 + $0xe8] sm:$0xf] %vm2011_vm1, %v2417_v12 }
 0x449   : > { %3230 = vst.msk [vmem:[%s4574_s23 + $0xe4] sm:$0xf] %vm2011_vm1, %v2544_v31 }
 0x44b   : > { %v2546_v23 = vpop.permute.xlu0 %2545 }
 0x44c   : > { %v2419_v26 = vpop.permute.xlu1 %2418  ;;  %3231 = vst.msk [vmem:[%s4574_s23 + $0xe8] sm:$0xf] %vm2011_vm1, %v2546_v23 }
 0x44d   : > { %3200 = vst.msk [vmem:[%s4568_s13 + $0xec] sm:$0xf] %vm2011_vm1, %v2419_v26 }
 0x44f   : > { %v2421_v5 = vpop.permute.xlu0 %2420 }
 0x450   : > { %v2548_v62 = vpop.permute.xlu1 %2547  ;;  %3201 = vst.msk [vmem:[%s4568_s13 + $0xf0] sm:$0xf] %vm2011_vm1, %v2421_v5 }
 0x451   : > { %3232 = vst.msk [vmem:[%s4574_s23 + $0xec] sm:$0xf] %vm2011_vm1, %v2548_v62 }
 0x453   : > { %v2550_v58 = vpop.permute.xlu0 %2549 }
 0x454   : > { %v2423_v3 = vpop.permute.xlu1 %2422  ;;  %3233 = vst.msk [vmem:[%s4574_s23 + $0xf0] sm:$0xf] %vm2011_vm1, %v2550_v58 }
 0x455   : > { %3202 = vst.msk [vmem:[%s4568_s13 + $0xf4] sm:$0xf] %vm2011_vm1, %v2423_v3 }
 0x457   : > { %v2425_v59 = vpop.permute.xlu0 %2424 }
 0x458   : > { %v2552_v47 = vpop.permute.xlu1 %2551  ;;  %3203 = vst.msk [vmem:[%s4568_s13 + $0xf8] sm:$0xf] %vm2011_vm1, %v2425_v59 }
 0x459   : > { %3234 = vst.msk [vmem:[%s4574_s23 + $0xf4] sm:$0xf] %vm2011_vm1, %v2552_v47 }
 0x467   : > { %v2554_v14 = vpop.permute.xlu0 %2553  ;;  %v2427_v39 = vpop.permute.xlu1 %2426 }
 0x468   : > { %3235 = vst.msk [vmem:[%s4574_s23 + $0xf8] sm:$0xf] %vm2011_vm1, %v2554_v14  ;;  %3204 = vst.msk [vmem:[%s4568_s13 + $0xfc] sm:$0xf] %vm2011_vm1, %v2427_v39 }
 0x46b   : > { %v2683_v20 = vpop.permute.xlu0 %2682  ;;  %v2556_v40 = vpop.permute.xlu1 %2555 }
 0x46c   : > { %3267 = vst.msk [vmem:[%s4588_s24 + $0xf8] sm:$0xf] %vm2011_vm1, %v2683_v20  ;;  %3236 = vst.msk [vmem:[%s4574_s23 + $0xfc] sm:$0xf] %vm2011_vm1, %v2556_v40 }
 0x46f   : > { %v2685_v9 = vpop.permute.xlu1 %2684 }
 0x470   : > { %3268 = vst.msk [vmem:[%s4588_s24 + $0xfc] sm:$0xf] %vm2011_vm1, %v2685_v9 }
 0x471 PF: > { %p3513_p4 = scmp.ge.s32.totalorder %s3742_s22, 2  ;;  %s2821_s0 = sand.u32 1, %s3722_s17  }
 0x472   : > { %s2822_s1 = scalar_lea.sflag [#allocation3], %s2821_s0 }
 0x473   : > { %p3510_p0 = pnand %p3513_p4, %p3856_p8 }
 0x475   : > { %p3511_p1 = pneg %p3510_p0 }
 0x477   : > { %3717 = dma.done.wait (%p3511_p1), %s2822_s1, 4096  }
 0x478   : > { %3719 = vsyncadd (%p3511_p1), %s2822_s1, 4294963200  ;;  %s25_s22 = sadd.s32 1, %s3742_s22   ;;  %s5372_s27 = sld [smem:[#allocation7_spill]] }
 0x479   : > { %p22_p2 = scmp.ge.s32.totalorder %s25_s22, 4   ;;  %s5373_s20 = sld [smem:[#allocation5_spill]] }
 0x47a   : > { %s5374_s21 = sld [smem:[#allocation6_spill]]  ;;  %s5375_s17 = smov %s3726_s18 }
 0x47b   : > { %s5376_s18 = smov %s3730_s19  ;;  %24 = sbr.rel (!%p22_p2) target bundleno = 7 (0x7), region = 132 }
 0x47e   : > { %s5377_s19 = smov %s5372_s27 }
 0x480   :  { %2863 = vsyncpa [#allocation3], 1 }
 0x481   :  { %2865 = vsyncpa [#allocation3 + $0x1], 1 }

</bundles_post_ra>
